<compile_context>
chip_gen: v6e
topology: v6e:2x2x1
jax: 0.10.0
libtpu: 0.0.40
codegen_flags: <defaults>
</compile_context>

<pallas_src>
import numpy as np
import jax
import jax.numpy as jnp
from jax.experimental import pallas as pl
from jax.experimental.pallas import tpu as pltpu

# ---- synthetic model configuration ------------------------------------------
NUM_ANCHORS = 3                     # A
NUM_CAT = 4                         # num_cat
TARGET_ID = 2                       # target_ID
C_PER_ANCHOR = 5 + NUM_CAT          # (x, y, w, h, obj, cls_0..cls_{num_cat-1})
NUM_SCALES = 3
LANE = 128
NEG_LARGE = -1.0e30                 # additive mask for padded positions


# ---- Pallas kernel -----------------------------------------------------------
def _maxpro_kernel(x_ref, wobj_ref, wcls_ref, bobj_ref, bcls_ref, mask_ref, o_ref):
    """Fused multi-scale head + MaxPro max for one block of Bt images.

    x_ref    : (Bt, Cin, Pp)  features, all scales concatenated along P (lanes)
    wobj_ref : (A, Cin, Pp)   per-position objectness weights (scale-expanded)
    wcls_ref : (A, Cin, Pp)   per-position target-class weights
    bobj_ref : (A, Pp)        per-position objectness biases
    bcls_ref : (A, Pp)        per-position target-class biases
    mask_ref : (1, Pp)        0.0 for valid positions, NEG_LARGE for padding
    o_ref    : (Bt, 128)      lane-dense output; per-image max broadcast across lanes
    """
    Bt, Cin, Pp = x_ref.shape
    A = wobj_ref.shape[0]

    x = x_ref[...]                                     # (Bt, Cin, Pp)
    wobj = wobj_ref[...]                               # (A, Cin, Pp)
    wcls = wcls_ref[...]
    bobj = bobj_ref[...]                               # (A, Pp)
    bcls = bcls_ref[...]
    mask = mask_ref[...]                               # (1, Pp)

    # Per-channel feature planes, P on lanes. Static slices only.
    xs = [x[:, c, :] for c in range(Cin)]              # each (Bt, Pp)

    best = None
    for a in range(A):                                 # A * Cin = 12 FMAs per head
        obj = bobj[a:a + 1, :]                         # (1, Pp)
        cls = bcls[a:a + 1, :]
        for c in range(Cin):
            obj = obj + xs[c] * wobj[a, c:c + 1, :]    # -> (Bt, Pp) VPU FMA
            cls = cls + xs[c] * wcls[a, c:c + 1, :]
        # YOLO-style sigmoid on raw head outputs (EUP), then score + pad mask.
        score = jax.nn.sigmoid(obj) * jax.nn.sigmoid(cls) + mask
        best = score if best is None else jnp.maximum(best, score)

    m = jnp.max(best, axis=1, keepdims=True)           # (Bt, 1) per-image max
    o_ref[...] = jnp.broadcast_to(m, (Bt, LANE)).astype(o_ref.dtype)


# ---- parameter preprocessing (done once, outside the forward hot path) -------
def init_params(key, cin):
    params = []
    for _ in range(NUM_SCALES):
        key, k1, k2 = jax.random.split(key, 3)
        W = jax.random.normal(k1, (cin, NUM_ANCHORS * C_PER_ANCHOR), jnp.float32) * 0.5
        b = jax.random.normal(k2, (NUM_ANCHORS * C_PER_ANCHOR,), jnp.float32) * 0.1
        params.append((W, b))
    return params


def prepare_head(params, H, W, target_id=TARGET_ID):
    """Slice the obj / target-class head columns with static indices and expand
    them to per-position (scale-dependent) weights laid out with P on lanes."""
    p_sizes = [(H // (2 ** s)) * (W // (2 ** s)) for s in range(NUM_SCALES)]
    P_total = sum(p_sizes)
    P_pad = ((P_total + LANE - 1) // LANE) * LANE

    wobj_parts, wcls_parts, bobj_parts, bcls_parts = [], [], [], []
    for s, (Wmat, bvec) in enumerate(params):
        Ps = p_sizes[s]
        cin = Wmat.shape[0]
        # static column indices -> static slices (no dynamic gather)
        w_obj = jnp.stack([Wmat[:, a * C_PER_ANCHOR + 4]
                           for a in range(NUM_ANCHORS)], axis=0)              # (A, Cin)
        w_cls = jnp.stack([Wmat[:, a * C_PER_ANCHOR + 5 + target_id]
                           for a in range(NUM_ANCHORS)], axis=0)
        b_obj = jnp.stack([bvec[a * C_PER_ANCHOR + 4]
                           for a in range(NUM_ANCHORS)])                      # (A,)
        b_cls = jnp.stack([bvec[a * C_PER_ANCHOR + 5 + target_id]
                           for a in range(NUM_ANCHORS)])
        wobj_parts.append(jnp.broadcast_to(w_obj[:, :, None], (NUM_ANCHORS, cin, Ps)))
        wcls_parts.append(jnp.broadcast_to(w_cls[:, :, None], (NUM_ANCHORS, cin, Ps)))
        bobj_parts.append(jnp.broadcast_to(b_obj[:, None], (NUM_ANCHORS, Ps)))
        bcls_parts.append(jnp.broadcast_to(b_cls[:, None], (NUM_ANCHORS, Ps)))

    pad = P_pad - P_total
    wobj = jnp.pad(jnp.concatenate(wobj_parts, axis=-1), ((0, 0), (0, 0), (0, pad)))
    wcls = jnp.pad(jnp.concatenate(wcls_parts, axis=-1), ((0, 0), (0, 0), (0, pad)))
    bobj = jnp.pad(jnp.concatenate(bobj_parts, axis=-1), ((0, 0), (0, pad)))
    bcls = jnp.pad(jnp.concatenate(bcls_parts, axis=-1), ((0, 0), (0, pad)))
    mask = jnp.concatenate(
        [jnp.zeros((1, P_total), jnp.float32),
         jnp.full((1, pad), NEG_LARGE, jnp.float32)], axis=-1)

    return dict(w_obj=wobj.astype(jnp.float32), w_cls=wcls.astype(jnp.float32),
                b_obj=bobj.astype(jnp.float32), b_cls=bcls.astype(jnp.float32),
                mask=mask, P_pad=P_pad)


# ---- glue: synthetic multi-scale backbone (NCHW avg-pool pyramid) ------------
def _build_features(x_nchw, P_pad):
    """(B, Cin, H, W) -> (B, Cin, P_pad): per-scale avg-pooled features,
    flattened and concatenated along P with zero padding to a lane multiple."""
    x = x_nchw.astype(jnp.float32)
    B, C, H, W = x.shape
    parts = []
    for s in range(NUM_SCALES):
        f = 2 ** s
        xs = x if f == 1 else x.reshape(B, C, H // f, f, W // f, f).mean(axis=(3, 5))
        parts.append(xs.reshape(B, C, -1))
    feats = jnp.concatenate(parts, axis=-1)                    # (B, C, P_total)
    P_total = feats.shape[-1]
    if P_pad > P_total:
        feats = jnp.pad(feats, ((0, 0), (0, 0), (0, P_pad - P_total)))
    return feats


def maxpro_forward(x_nchw, head):
    """Pallas implementation of MaxPro.forward(x) with the synthetic 3-scale model."""
    B = x_nchw.shape[0]
    P_pad = head["P_pad"]
    feats = _build_features(x_nchw, P_pad)                     # (B, Cin, P_pad)
    Cin = feats.shape[1]
    A = head["w_obj"].shape[0]

    # Batch blocking: whole batch in one step when small, else blocks of 8
    # (padded so the (Bt, 128) output block stays sublane-aligned).
    if B <= 8:
        Bt, Bp = B, B
    else:
        Bt = 8
        Bp = ((B + Bt - 1) // Bt) * Bt
        if Bp != B:
            feats = jnp.pad(feats, ((0, Bp - B), (0, 0), (0, 0)))

    out = pl.pallas_call(
        _maxpro_kernel,
        out_shape=jax.ShapeDtypeStruct((Bp, LANE), jnp.float32),
        grid_spec=pltpu.PrefetchScalarGridSpec(
            num_scalar_prefetch=0,
            grid=(Bp // Bt,),
            in_specs=[
                pl.BlockSpec((Bt, Cin, P_pad), lambda b: (b, 0, 0)),
                pl.BlockSpec((A, Cin, P_pad), lambda b: (0, 0, 0)),
                pl.BlockSpec((A, Cin, P_pad), lambda b: (0, 0, 0)),
                pl.BlockSpec((A, P_pad), lambda b: (0, 0)),
                pl.BlockSpec((A, P_pad), lambda b: (0, 0)),
                pl.BlockSpec((1, P_pad), lambda b: (0, 0)),
            ],
            out_specs=pl.BlockSpec((Bt, LANE), lambda b: (b, 0)),
        ),
        # batch axis independent per block -> "parallel" (2 TCs on v7x; no-op v5e/v6e)
        compiler_params=pltpu.CompilerParams(dimension_semantics=("parallel",)),
    )(feats, head["w_obj"], head["w_cls"], head["b_obj"], head["b_cls"], head["mask"])
    return out[:B, 0]                                          # (B,) max_final_score


# ---- pure-JAX reference matching the PyTorch MaxPro.forward semantics --------
def maxpro_reference(x_nchw, params, num_cat=NUM_CAT, target_id=TARGET_ID):
    x = x_nchw.astype(jnp.float32)
    B, C, H, W = x.shape
    outputs = []
    for s, (Wmat, b) in enumerate(params):
        f = 2 ** s
        xs = x if f == 1 else x.reshape(B, C, H // f, f, W // f, f).mean(axis=(3, 5))
        Hs, Ws = H // f, W // f
        feats = jnp.transpose(xs, (0, 2, 3, 1)).reshape(B * Hs * Ws, C)
        head = jnp.dot(feats, Wmat, precision=jax.lax.Precision.HIGHEST) + b
        head = jax.nn.sigmoid(head)
        head = head.reshape(B, Hs, Ws, NUM_ANCHORS, C_PER_ANCHOR)
        head = jnp.transpose(head, (0, 3, 1, 2, 4))            # (B, A, H, W, 5+num_cat)
        outputs.append(head)
    flat = [o.reshape(o.shape[0], o.shape[1] * o.shape[2] * o.shape[3], o.shape[4])
            for o in outputs]
    all_outputs = jnp.concatenate(flat, axis=1)
    class_confidence = all_outputs[:, :, 5:5 + num_cat][:, :, target_id]
    objectness = all_outputs[:, :, 4]
    final_score = objectness * class_confidence
    return jnp.max(final_score, axis=1)


if __name__ == "__main__":
    key = jax.random.PRNGKey(0)
    kx, kp = jax.random.split(key)
    x = jax.random.normal(kx, (2, 4, 16, 16), jnp.float32)     # NCHW like PyTorch
    params = init_params(kp, cin=4)

    # Parameter preprocessing done once (static slices, scale-expanded weights).
    head = prepare_head(params, H=16, W=16)

    out = maxpro_forward(x, head)
    out = jax.block_until_ready(out)

    ref = maxpro_reference(x, params)
    np.testing.assert_allclose(np.asarray(out), np.asarray(ref), rtol=2e-3, atol=2e-3)
    print("KERNEL_OK")
</pallas_src>

<mosaic_0001>
module attributes {stable_mosaic.version = 11 : i64} {
  func.func @_maxpro_kernel(%arg0: i32, %arg1: memref<2x4x384xf32, #tpu.memory_space<vmem>>, %arg2: memref<3x4x384xf32, #tpu.memory_space<vmem>>, %arg3: memref<3x4x384xf32, #tpu.memory_space<vmem>>, %arg4: memref<3x384xf32, #tpu.memory_space<vmem>>, %arg5: memref<3x384xf32, #tpu.memory_space<vmem>>, %arg6: memref<1x384xf32, #tpu.memory_space<vmem>>, %arg7: memref<2x128xf32, #tpu.memory_space<vmem>>) attributes {dimension_semantics = [#tpu.dimension_semantics<parallel>], iteration_bounds = array<i64: 1>, scalar_prefetch = 0 : i64, scratch_operands = 0 : i64, tpu.core_type = #tpu.core_type<tc>, window_params = [{transform_indices = @transform_0, window_bounds = array<i64: 2, 4, 384>}, {pipeline_mode = #tpu.pipeline_mode<synchronous>, transform_indices = @transform_1, window_bounds = array<i64: 3, 4, 384>}, {pipeline_mode = #tpu.pipeline_mode<synchronous>, transform_indices = @transform_2, window_bounds = array<i64: 3, 4, 384>}, {pipeline_mode = #tpu.pipeline_mode<synchronous>, transform_indices = @transform_3, window_bounds = array<i64: 3, 384>}, {pipeline_mode = #tpu.pipeline_mode<synchronous>, transform_indices = @transform_4, window_bounds = array<i64: 3, 384>}, {pipeline_mode = #tpu.pipeline_mode<synchronous>, transform_indices = @transform_5, window_bounds = array<i64: 1, 384>}, {transform_indices = @transform_6, window_bounds = array<i64: 2, 128>}]} {
    %c0 = arith.constant 0 : index
    %c0_0 = arith.constant 0 : index
    %c0_1 = arith.constant 0 : index
    %0 = vector.load %arg1[%c0, %c0_0, %c0_1] : memref<2x4x384xf32, #tpu.memory_space<vmem>>, vector<2x4x384xf32>
    %c0_2 = arith.constant 0 : index
    %c0_3 = arith.constant 0 : index
    %c0_4 = arith.constant 0 : index
    %1 = vector.load %arg2[%c0_2, %c0_3, %c0_4] : memref<3x4x384xf32, #tpu.memory_space<vmem>>, vector<3x4x384xf32>
    %c0_5 = arith.constant 0 : index
    %c0_6 = arith.constant 0 : index
    %c0_7 = arith.constant 0 : index
    %2 = vector.load %arg3[%c0_5, %c0_6, %c0_7] : memref<3x4x384xf32, #tpu.memory_space<vmem>>, vector<3x4x384xf32>
    %c0_8 = arith.constant 0 : index
    %c0_9 = arith.constant 0 : index
    %3 = vector.load %arg4[%c0_8, %c0_9] : memref<3x384xf32, #tpu.memory_space<vmem>>, vector<3x384xf32>
    %c0_10 = arith.constant 0 : index
    %c0_11 = arith.constant 0 : index
    %4 = vector.load %arg5[%c0_10, %c0_11] : memref<3x384xf32, #tpu.memory_space<vmem>>, vector<3x384xf32>
    %c0_12 = arith.constant 0 : index
    %c0_13 = arith.constant 0 : index
    %5 = vector.load %arg6[%c0_12, %c0_13] : memref<1x384xf32, #tpu.memory_space<vmem>>, vector<1x384xf32>
    %6 = vector.extract_strided_slice %0 {offsets = [0, 0, 0], sizes = [2, 1, 384], strides = [1, 1, 1]} : vector<2x4x384xf32> to vector<2x1x384xf32>
    %7 = vector.shape_cast %6 : vector<2x1x384xf32> to vector<2x384xf32>
    %8 = vector.extract_strided_slice %0 {offsets = [0, 1, 0], sizes = [2, 1, 384], strides = [1, 1, 1]} : vector<2x4x384xf32> to vector<2x1x384xf32>
    %9 = vector.shape_cast %8 : vector<2x1x384xf32> to vector<2x384xf32>
    %10 = vector.extract_strided_slice %0 {offsets = [0, 2, 0], sizes = [2, 1, 384], strides = [1, 1, 1]} : vector<2x4x384xf32> to vector<2x1x384xf32>
    %11 = vector.shape_cast %10 : vector<2x1x384xf32> to vector<2x384xf32>
    %12 = vector.extract_strided_slice %0 {offsets = [0, 3, 0], sizes = [2, 1, 384], strides = [1, 1, 1]} : vector<2x4x384xf32> to vector<2x1x384xf32>
    %13 = vector.shape_cast %12 : vector<2x1x384xf32> to vector<2x384xf32>
    %14 = vector.extract_strided_slice %3 {offsets = [0, 0], sizes = [1, 384], strides = [1, 1]} : vector<3x384xf32> to vector<1x384xf32>
    %15 = vector.extract_strided_slice %4 {offsets = [0, 0], sizes = [1, 384], strides = [1, 1]} : vector<3x384xf32> to vector<1x384xf32>
    %16 = vector.extract_strided_slice %1 {offsets = [0, 0, 0], sizes = [1, 1, 384], strides = [1, 1, 1]} : vector<3x4x384xf32> to vector<1x1x384xf32>
    %17 = vector.shape_cast %16 : vector<1x1x384xf32> to vector<1x384xf32>
    %18 = vector.broadcast %17 : vector<1x384xf32> to vector<2x384xf32>
    %19 = arith.mulf %7, %18 : vector<2x384xf32>
    %20 = vector.broadcast %14 : vector<1x384xf32> to vector<2x384xf32>
    %21 = arith.addf %20, %19 : vector<2x384xf32>
    %22 = vector.extract_strided_slice %2 {offsets = [0, 0, 0], sizes = [1, 1, 384], strides = [1, 1, 1]} : vector<3x4x384xf32> to vector<1x1x384xf32>
    %23 = vector.shape_cast %22 : vector<1x1x384xf32> to vector<1x384xf32>
    %24 = vector.broadcast %23 : vector<1x384xf32> to vector<2x384xf32>
    %25 = arith.mulf %7, %24 : vector<2x384xf32>
    %26 = vector.broadcast %15 : vector<1x384xf32> to vector<2x384xf32>
    %27 = arith.addf %26, %25 : vector<2x384xf32>
    %28 = vector.extract_strided_slice %1 {offsets = [0, 1, 0], sizes = [1, 1, 384], strides = [1, 1, 1]} : vector<3x4x384xf32> to vector<1x1x384xf32>
    %29 = vector.shape_cast %28 : vector<1x1x384xf32> to vector<1x384xf32>
    %30 = vector.broadcast %29 : vector<1x384xf32> to vector<2x384xf32>
    %31 = arith.mulf %9, %30 : vector<2x384xf32>
    %32 = arith.addf %21, %31 : vector<2x384xf32>
    %33 = vector.extract_strided_slice %2 {offsets = [0, 1, 0], sizes = [1, 1, 384], strides = [1, 1, 1]} : vector<3x4x384xf32> to vector<1x1x384xf32>
    %34 = vector.shape_cast %33 : vector<1x1x384xf32> to vector<1x384xf32>
    %35 = vector.broadcast %34 : vector<1x384xf32> to vector<2x384xf32>
    %36 = arith.mulf %9, %35 : vector<2x384xf32>
    %37 = arith.addf %27, %36 : vector<2x384xf32>
    %38 = vector.extract_strided_slice %1 {offsets = [0, 2, 0], sizes = [1, 1, 384], strides = [1, 1, 1]} : vector<3x4x384xf32> to vector<1x1x384xf32>
    %39 = vector.shape_cast %38 : vector<1x1x384xf32> to vector<1x384xf32>
    %40 = vector.broadcast %39 : vector<1x384xf32> to vector<2x384xf32>
    %41 = arith.mulf %11, %40 : vector<2x384xf32>
    %42 = arith.addf %32, %41 : vector<2x384xf32>
    %43 = vector.extract_strided_slice %2 {offsets = [0, 2, 0], sizes = [1, 1, 384], strides = [1, 1, 1]} : vector<3x4x384xf32> to vector<1x1x384xf32>
    %44 = vector.shape_cast %43 : vector<1x1x384xf32> to vector<1x384xf32>
    %45 = vector.broadcast %44 : vector<1x384xf32> to vector<2x384xf32>
    %46 = arith.mulf %11, %45 : vector<2x384xf32>
    %47 = arith.addf %37, %46 : vector<2x384xf32>
    %48 = vector.extract_strided_slice %1 {offsets = [0, 3, 0], sizes = [1, 1, 384], strides = [1, 1, 1]} : vector<3x4x384xf32> to vector<1x1x384xf32>
    %49 = vector.shape_cast %48 : vector<1x1x384xf32> to vector<1x384xf32>
    %50 = vector.broadcast %49 : vector<1x384xf32> to vector<2x384xf32>
    %51 = arith.mulf %13, %50 : vector<2x384xf32>
    %52 = arith.addf %42, %51 : vector<2x384xf32>
    %53 = vector.extract_strided_slice %2 {offsets = [0, 3, 0], sizes = [1, 1, 384], strides = [1, 1, 1]} : vector<3x4x384xf32> to vector<1x1x384xf32>
    %54 = vector.shape_cast %53 : vector<1x1x384xf32> to vector<1x384xf32>
    %55 = vector.broadcast %54 : vector<1x384xf32> to vector<2x384xf32>
    %56 = arith.mulf %13, %55 : vector<2x384xf32>
    %57 = arith.addf %47, %56 : vector<2x384xf32>
    %58 = arith.negf %52 : vector<2x384xf32>
    %59 = math.exp %58 : vector<2x384xf32>
    %cst = arith.constant 1.000000e+00 : f32
    %60 = vector.broadcast %cst : f32 to vector<2x384xf32>
    %61 = arith.addf %60, %59 : vector<2x384xf32>
    %62 = arith.divf %60, %61 : vector<2x384xf32>
    %63 = arith.negf %57 : vector<2x384xf32>
    %64 = math.exp %63 : vector<2x384xf32>
    %cst_14 = arith.constant 1.000000e+00 : f32
    %65 = vector.broadcast %cst_14 : f32 to vector<2x384xf32>
    %66 = arith.addf %65, %64 : vector<2x384xf32>
    %67 = arith.divf %65, %66 : vector<2x384xf32>
    %68 = arith.mulf %62, %67 : vector<2x384xf32>
    %69 = vector.broadcast %5 : vector<1x384xf32> to vector<2x384xf32>
    %70 = arith.addf %68, %69 : vector<2x384xf32>
    %71 = vector.extract_strided_slice %3 {offsets = [1, 0], sizes = [1, 384], strides = [1, 1]} : vector<3x384xf32> to vector<1x384xf32>
    %72 = vector.extract_strided_slice %4 {offsets = [1, 0], sizes = [1, 384], strides = [1, 1]} : vector<3x384xf32> to vector<1x384xf32>
    %73 = vector.extract_strided_slice %1 {offsets = [1, 0, 0], sizes = [1, 1, 384], strides = [1, 1, 1]} : vector<3x4x384xf32> to vector<1x1x384xf32>
    %74 = vector.shape_cast %73 : vector<1x1x384xf32> to vector<1x384xf32>
    %75 = vector.broadcast %74 : vector<1x384xf32> to vector<2x384xf32>
    %76 = arith.mulf %7, %75 : vector<2x384xf32>
    %77 = vector.broadcast %71 : vector<1x384xf32> to vector<2x384xf32>
    %78 = arith.addf %77, %76 : vector<2x384xf32>
    %79 = vector.extract_strided_slice %2 {offsets = [1, 0, 0], sizes = [1, 1, 384], strides = [1, 1, 1]} : vector<3x4x384xf32> to vector<1x1x384xf32>
    %80 = vector.shape_cast %79 : vector<1x1x384xf32> to vector<1x384xf32>
    %81 = vector.broadcast %80 : vector<1x384xf32> to vector<2x384xf32>
    %82 = arith.mulf %7, %81 : vector<2x384xf32>
    %83 = vector.broadcast %72 : vector<1x384xf32> to vector<2x384xf32>
    %84 = arith.addf %83, %82 : vector<2x384xf32>
    %85 = vector.extract_strided_slice %1 {offsets = [1, 1, 0], sizes = [1, 1, 384], strides = [1, 1, 1]} : vector<3x4x384xf32> to vector<1x1x384xf32>
    %86 = vector.shape_cast %85 : vector<1x1x384xf32> to vector<1x384xf32>
    %87 = vector.broadcast %86 : vector<1x384xf32> to vector<2x384xf32>
    %88 = arith.mulf %9, %87 : vector<2x384xf32>
    %89 = arith.addf %78, %88 : vector<2x384xf32>
    %90 = vector.extract_strided_slice %2 {offsets = [1, 1, 0], sizes = [1, 1, 384], strides = [1, 1, 1]} : vector<3x4x384xf32> to vector<1x1x384xf32>
    %91 = vector.shape_cast %90 : vector<1x1x384xf32> to vector<1x384xf32>
    %92 = vector.broadcast %91 : vector<1x384xf32> to vector<2x384xf32>
    %93 = arith.mulf %9, %92 : vector<2x384xf32>
    %94 = arith.addf %84, %93 : vector<2x384xf32>
    %95 = vector.extract_strided_slice %1 {offsets = [1, 2, 0], sizes = [1, 1, 384], strides = [1, 1, 1]} : vector<3x4x384xf32> to vector<1x1x384xf32>
    %96 = vector.shape_cast %95 : vector<1x1x384xf32> to vector<1x384xf32>
    %97 = vector.broadcast %96 : vector<1x384xf32> to vector<2x384xf32>
    %98 = arith.mulf %11, %97 : vector<2x384xf32>
    %99 = arith.addf %89, %98 : vector<2x384xf32>
    %100 = vector.extract_strided_slice %2 {offsets = [1, 2, 0], sizes = [1, 1, 384], strides = [1, 1, 1]} : vector<3x4x384xf32> to vector<1x1x384xf32>
    %101 = vector.shape_cast %100 : vector<1x1x384xf32> to vector<1x384xf32>
    %102 = vector.broadcast %101 : vector<1x384xf32> to vector<2x384xf32>
    %103 = arith.mulf %11, %102 : vector<2x384xf32>
    %104 = arith.addf %94, %103 : vector<2x384xf32>
    %105 = vector.extract_strided_slice %1 {offsets = [1, 3, 0], sizes = [1, 1, 384], strides = [1, 1, 1]} : vector<3x4x384xf32> to vector<1x1x384xf32>
    %106 = vector.shape_cast %105 : vector<1x1x384xf32> to vector<1x384xf32>
    %107 = vector.broadcast %106 : vector<1x384xf32> to vector<2x384xf32>
    %108 = arith.mulf %13, %107 : vector<2x384xf32>
    %109 = arith.addf %99, %108 : vector<2x384xf32>
    %110 = vector.extract_strided_slice %2 {offsets = [1, 3, 0], sizes = [1, 1, 384], strides = [1, 1, 1]} : vector<3x4x384xf32> to vector<1x1x384xf32>
    %111 = vector.shape_cast %110 : vector<1x1x384xf32> to vector<1x384xf32>
    %112 = vector.broadcast %111 : vector<1x384xf32> to vector<2x384xf32>
    %113 = arith.mulf %13, %112 : vector<2x384xf32>
    %114 = arith.addf %104, %113 : vector<2x384xf32>
    %115 = arith.negf %109 : vector<2x384xf32>
    %116 = math.exp %115 : vector<2x384xf32>
    %cst_15 = arith.constant 1.000000e+00 : f32
    %117 = vector.broadcast %cst_15 : f32 to vector<2x384xf32>
    %118 = arith.addf %117, %116 : vector<2x384xf32>
    %119 = arith.divf %117, %118 : vector<2x384xf32>
    %120 = arith.negf %114 : vector<2x384xf32>
    %121 = math.exp %120 : vector<2x384xf32>
    %cst_16 = arith.constant 1.000000e+00 : f32
    %122 = vector.broadcast %cst_16 : f32 to vector<2x384xf32>
    %123 = arith.addf %122, %121 : vector<2x384xf32>
    %124 = arith.divf %122, %123 : vector<2x384xf32>
    %125 = arith.mulf %119, %124 : vector<2x384xf32>
    %126 = vector.broadcast %5 : vector<1x384xf32> to vector<2x384xf32>
    %127 = arith.addf %125, %126 : vector<2x384xf32>
    %128 = arith.maximumf %70, %127 : vector<2x384xf32>
    %129 = vector.extract_strided_slice %3 {offsets = [2, 0], sizes = [1, 384], strides = [1, 1]} : vector<3x384xf32> to vector<1x384xf32>
    %130 = vector.extract_strided_slice %4 {offsets = [2, 0], sizes = [1, 384], strides = [1, 1]} : vector<3x384xf32> to vector<1x384xf32>
    %131 = vector.extract_strided_slice %1 {offsets = [2, 0, 0], sizes = [1, 1, 384], strides = [1, 1, 1]} : vector<3x4x384xf32> to vector<1x1x384xf32>
    %132 = vector.shape_cast %131 : vector<1x1x384xf32> to vector<1x384xf32>
    %133 = vector.broadcast %132 : vector<1x384xf32> to vector<2x384xf32>
    %134 = arith.mulf %7, %133 : vector<2x384xf32>
    %135 = vector.broadcast %129 : vector<1x384xf32> to vector<2x384xf32>
    %136 = arith.addf %135, %134 : vector<2x384xf32>
    %137 = vector.extract_strided_slice %2 {offsets = [2, 0, 0], sizes = [1, 1, 384], strides = [1, 1, 1]} : vector<3x4x384xf32> to vector<1x1x384xf32>
    %138 = vector.shape_cast %137 : vector<1x1x384xf32> to vector<1x384xf32>
    %139 = vector.broadcast %138 : vector<1x384xf32> to vector<2x384xf32>
    %140 = arith.mulf %7, %139 : vector<2x384xf32>
    %141 = vector.broadcast %130 : vector<1x384xf32> to vector<2x384xf32>
    %142 = arith.addf %141, %140 : vector<2x384xf32>
    %143 = vector.extract_strided_slice %1 {offsets = [2, 1, 0], sizes = [1, 1, 384], strides = [1, 1, 1]} : vector<3x4x384xf32> to vector<1x1x384xf32>
    %144 = vector.shape_cast %143 : vector<1x1x384xf32> to vector<1x384xf32>
    %145 = vector.broadcast %144 : vector<1x384xf32> to vector<2x384xf32>
    %146 = arith.mulf %9, %145 : vector<2x384xf32>
    %147 = arith.addf %136, %146 : vector<2x384xf32>
    %148 = vector.extract_strided_slice %2 {offsets = [2, 1, 0], sizes = [1, 1, 384], strides = [1, 1, 1]} : vector<3x4x384xf32> to vector<1x1x384xf32>
    %149 = vector.shape_cast %148 : vector<1x1x384xf32> to vector<1x384xf32>
    %150 = vector.broadcast %149 : vector<1x384xf32> to vector<2x384xf32>
    %151 = arith.mulf %9, %150 : vector<2x384xf32>
    %152 = arith.addf %142, %151 : vector<2x384xf32>
    %153 = vector.extract_strided_slice %1 {offsets = [2, 2, 0], sizes = [1, 1, 384], strides = [1, 1, 1]} : vector<3x4x384xf32> to vector<1x1x384xf32>
    %154 = vector.shape_cast %153 : vector<1x1x384xf32> to vector<1x384xf32>
    %155 = vector.broadcast %154 : vector<1x384xf32> to vector<2x384xf32>
    %156 = arith.mulf %11, %155 : vector<2x384xf32>
    %157 = arith.addf %147, %156 : vector<2x384xf32>
    %158 = vector.extract_strided_slice %2 {offsets = [2, 2, 0], sizes = [1, 1, 384], strides = [1, 1, 1]} : vector<3x4x384xf32> to vector<1x1x384xf32>
    %159 = vector.shape_cast %158 : vector<1x1x384xf32> to vector<1x384xf32>
    %160 = vector.broadcast %159 : vector<1x384xf32> to vector<2x384xf32>
    %161 = arith.mulf %11, %160 : vector<2x384xf32>
    %162 = arith.addf %152, %161 : vector<2x384xf32>
    %163 = vector.extract_strided_slice %1 {offsets = [2, 3, 0], sizes = [1, 1, 384], strides = [1, 1, 1]} : vector<3x4x384xf32> to vector<1x1x384xf32>
    %164 = vector.shape_cast %163 : vector<1x1x384xf32> to vector<1x384xf32>
    %165 = vector.broadcast %164 : vector<1x384xf32> to vector<2x384xf32>
    %166 = arith.mulf %13, %165 : vector<2x384xf32>
    %167 = arith.addf %157, %166 : vector<2x384xf32>
    %168 = vector.extract_strided_slice %2 {offsets = [2, 3, 0], sizes = [1, 1, 384], strides = [1, 1, 1]} : vector<3x4x384xf32> to vector<1x1x384xf32>
    %169 = vector.shape_cast %168 : vector<1x1x384xf32> to vector<1x384xf32>
    %170 = vector.broadcast %169 : vector<1x384xf32> to vector<2x384xf32>
    %171 = arith.mulf %13, %170 : vector<2x384xf32>
    %172 = arith.addf %162, %171 : vector<2x384xf32>
    %173 = arith.negf %167 : vector<2x384xf32>
    %174 = math.exp %173 : vector<2x384xf32>
    %cst_17 = arith.constant 1.000000e+00 : f32
    %175 = vector.broadcast %cst_17 : f32 to vector<2x384xf32>
    %176 = arith.addf %175, %174 : vector<2x384xf32>
    %177 = arith.divf %175, %176 : vector<2x384xf32>
    %178 = arith.negf %172 : vector<2x384xf32>
    %179 = math.exp %178 : vector<2x384xf32>
    %cst_18 = arith.constant 1.000000e+00 : f32
    %180 = vector.broadcast %cst_18 : f32 to vector<2x384xf32>
    %181 = arith.addf %180, %179 : vector<2x384xf32>
    %182 = arith.divf %180, %181 : vector<2x384xf32>
    %183 = arith.mulf %177, %182 : vector<2x384xf32>
    %184 = vector.broadcast %5 : vector<1x384xf32> to vector<2x384xf32>
    %185 = arith.addf %183, %184 : vector<2x384xf32>
    %186 = arith.maximumf %128, %185 : vector<2x384xf32>
    %cst_19 = arith.constant dense<0xFF800000> : vector<2xf32>
    %187 = vector.multi_reduction <maximumf>, %186, %cst_19 [1] : vector<2x384xf32> to vector<2xf32>
    %188 = vector.shape_cast %187 : vector<2xf32> to vector<2x1xf32>
    %189 = vector.shape_cast %188 : vector<2x1xf32> to vector<2x1xf32>
    %190 = vector.broadcast %189 : vector<2x1xf32> to vector<2x128xf32>
    %c0_20 = arith.constant 0 : index
    %c0_21 = arith.constant 0 : index
    %191 = vector.load %arg7[%c0_20, %c0_21] : memref<2x128xf32, #tpu.memory_space<vmem>>, vector<2x128xf32>
    tpu.vector_store %arg7[%c0_20, %c0_21], %190 {strides = array<i32>} : memref<2x128xf32, #tpu.memory_space<vmem>>, vector<2x128xf32>,
    return
  }
  func.func @transform_0(%arg0: i32) -> (i32, i32, i32) {
    %c0_i32 = arith.constant 0 : i32
    %c0_i32_0 = arith.constant 0 : i32
    %c0_i32_1 = arith.constant 0 : i32
    return %arg0, %c0_i32, %c0_i32_0 : i32, i32, i32
  }
  func.func @transform_1(%arg0: i32) -> (i32, i32, i32) {
    %c0_i32 = arith.constant 0 : i32
    %c0_i32_0 = arith.constant 0 : i32
    %c0_i32_1 = arith.constant 0 : i32
    %c0_i32_2 = arith.constant 0 : i32
    return %c0_i32, %c0_i32_0, %c0_i32_1 : i32, i32, i32
  }
  func.func @transform_2(%arg0: i32) -> (i32, i32, i32) {
    %c0_i32 = arith.constant 0 : i32
    %c0_i32_0 = arith.constant 0 : i32
    %c0_i32_1 = arith.constant 0 : i32
    %c0_i32_2 = arith.constant 0 : i32
    return %c0_i32, %c0_i32_0, %c0_i32_1 : i32, i32, i32
  }
  func.func @transform_3(%arg0: i32) -> (i32, i32) {
    %c0_i32 = arith.constant 0 : i32
    %c0_i32_0 = arith.constant 0 : i32
    %c0_i32_1 = arith.constant 0 : i32
    return %c0_i32, %c0_i32_0 : i32, i32
  }
  func.func @transform_4(%arg0: i32) -> (i32, i32) {
    %c0_i32 = arith.constant 0 : i32
    %c0_i32_0 = arith.constant 0 : i32
    %c0_i32_1 = arith.constant 0 : i32
    return %c0_i32, %c0_i32_0 : i32, i32
  }
  func.func @transform_5(%arg0: i32) -> (i32, i32) {
    %c0_i32 = arith.constant 0 : i32
    %c0_i32_0 = arith.constant 0 : i32
    %c0_i32_1 = arith.constant 0 : i32
    return %c0_i32, %c0_i32_0 : i32, i32
  }
  func.func @transform_6(%arg0: i32) -> (i32, i32) {
    %c0_i32 = arith.constant 0 : i32
    %c0_i32_0 = arith.constant 0 : i32
    return %arg0, %c0_i32 : i32, i32
  }
}

</mosaic_0001>

<bundles_post_ra>
// kernel: tpu_custom_call.1
= control target key start
LH: loop header
LB: loop body
LE: loop exit
PB: predicated region body
PF: predicated region fallthrough
CT: control target
= control target key end

     0   :  { %11 = vsyncpa [#allocation3], 0  ;;  %s3406_s0 = inlined_call_operand.hbm [shape: f32[2,4,384], index: 0, kind: input, shape index: {}]   ;;  %s3407_s1 = inlined_call_operand.hbm [shape: f32[3,4,384], index: 1, kind: input, shape index: {}]   ;;  %s3408_s2 = inlined_call_operand.hbm [shape: f32[3,4,384], index: 2, kind: input, shape index: {}]   ;;  %s3409_s3 = inlined_call_operand.hbm [shape: f32[3,384], index: 3, kind: input, shape index: {}]   ;;  %s3410_s4 = inlined_call_operand.hbm [shape: f32[3,384], index: 4, kind: input, shape index: {}]   ;;  %s3411_s5 = inlined_call_operand.vmem [shape: f32[1,384], index: 5, kind: input, shape index: {}]   ;;  %s3412_s6 = inlined_call_operand.hbm [shape: f32[2,128], index: 6, kind: output, shape index: {}]  }
   0x1   :  { %12 = vsyncpa [#allocation6], 0 }
   0x2   :  { %13 = vsyncpa [#allocation9], 0 }
   0x3   :  { %14 = vsyncpa [#allocation4], 0  ;;  %s2588_s21 = smov [#allocation5]   ;;  %s2589_s23 = smov [#allocation8]  }
   0x4   :  { %s32_s22 = sshll.u32 %s2588_s21, 4  ;;  %s57_s24 = sshll.u32 %s2589_s23, 4  ;;  %s33_s22 = int_to_ptr.vmem [resolvable:$true] %s32_s22  ;;  %s58_s24 = int_to_ptr.vmem [resolvable:$true] %s57_s24 }
   0x5   :  { %s2468_s25 = scalar_lea.vmem %s33_s22, 576  ;;  %p2473_p1 = scmp.lt.s32.totalorder %s33_s22, %s33_s22 }
   0x6   :  { %p2469_p0 = scmp.ne.s32.totalorder %s33_s22, %s2468_s25  ;;  %p2474_p2 = scmp.lt.s32.totalorder %s2468_s25, %s2468_s25 }
   0x8   :  { %p2475_p3 = por %p2474_p2, %p2473_p1 }
   0xa   :  { %p2476_p4 = pnand %p2475_p3, %p2469_p0 }
   0xc   :  { %2479 = shalt.err (!%p2476_p4)
}
   0xd   :  { %s2590_s26 = smov 192   ;;  %s2591_s27 = smov 12  }
   0xe   :  { %38 = dma.hbm_to_vmem [thread:$0]  %s3407_s1, 576, %s33_s22, [#allocation6], %s2590_s26, %s2590_s26, %s2591_s27  }
   0xf   :  { %s2488_s30 = scalar_lea.vmem %s58_s24, 192  ;;  %p2493_p6 = scmp.lt.s32.totalorder %s58_s24, %s58_s24 }
  0x10   :  { %p2489_p5 = scmp.ne.s32.totalorder %s58_s24, %s2488_s30  ;;  %p2494_p7 = scmp.lt.s32.totalorder %s2488_s30, %s2488_s30 }
  0x12   :  { %p2495_p8 = por %p2494_p7, %p2493_p6 }
  0x14   :  { %p2496_p9 = pnand %p2495_p8, %p2489_p5 }
  0x16   :  { %2499 = shalt.err (!%p2496_p9)
}
  0x17   :  { %60 = dma.hbm_to_vmem [thread:$0]  %s3409_s3, 192, %s58_s24, [#allocation9]  }
  0x18   :  { %s2592_s9 = smov [#allocation2]   ;;  %s2593_s11 = smov [#allocation7]  }
  0x19   :  { %s20_s10 = sshll.u32 %s2592_s9, 4  ;;  %s44_s12 = sshll.u32 %s2593_s11, 4  ;;  %s21_s10 = int_to_ptr.vmem [resolvable:$true] %s20_s10  ;;  %s45_s12 = int_to_ptr.vmem [resolvable:$true] %s44_s12 }
  0x1a   :  { %s2508_s13 = scalar_lea.vmem %s21_s10, 384  ;;  %p2513_p11 = scmp.lt.s32.totalorder %s21_s10, %s21_s10 }
  0x1b   :  { %p2509_p10 = scmp.ne.s32.totalorder %s21_s10, %s2508_s13  ;;  %p2514_p12 = scmp.lt.s32.totalorder %s2508_s13, %s2508_s13 }
  0x1d   :  { %p2515_p13 = por %p2514_p12, %p2513_p11 }
  0x1f   :  { %p2516_p0 = pnand %p2515_p13, %p2509_p10 }
  0x21   :  { %2519 = shalt.err (!%p2516_p0)
}
  0x22   :  { %26 = dma.hbm_to_vmem [thread:$0]  %s3406_s0, 384, %s21_s10, [#allocation3], %s2590_s26, %s2590_s26, %s2591_s27  }
  0x23   :  { %s2528_s3 = scalar_lea.vmem %s45_s12, 576  ;;  %p2533_p2 = scmp.lt.s32.totalorder %s45_s12, %s45_s12 }
  0x24   :  { %p2529_p1 = scmp.ne.s32.totalorder %s45_s12, %s2528_s3  ;;  %p2534_p3 = scmp.lt.s32.totalorder %s2528_s3, %s2528_s3 }
  0x26   :  { %p2535_p4 = por %p2534_p3, %p2533_p2 }
  0x28   :  { %p2536_p5 = pnand %p2535_p4, %p2529_p1 }
  0x2a   :  { %2539 = shalt.err (!%p2536_p5)
}
  0x2b   :  { %50 = dma.hbm_to_vmem [thread:$0]  %s3408_s2, 576, %s45_s12, [#allocation6], %s2590_s26, %s2590_s26, %s2591_s27  }
  0x2c   :  { %s2594_s17 = smov [#allocation10]  }
  0x2d   :  { %s67_s18 = sshll.u32 %s2594_s17, 4  ;;  %s68_s18 = int_to_ptr.vmem [resolvable:$true] %s67_s18 }
  0x2e   :  { %s2548_s19 = scalar_lea.vmem %s68_s18, 192  ;;  %p2553_p7 = scmp.lt.s32.totalorder %s68_s18, %s68_s18 }
  0x2f   :  { %p2549_p6 = scmp.ne.s32.totalorder %s68_s18, %s2548_s19  ;;  %p2554_p8 = scmp.lt.s32.totalorder %s2548_s19, %s2548_s19 }
  0x31   :  { %p2555_p9 = por %p2554_p8, %p2553_p7 }
  0x33   :  { %p2556_p10 = pnand %p2555_p9, %p2549_p6 }
  0x35   :  { %2559 = shalt.err (!%p2556_p10)
}
  0x36   :  { %70 = dma.hbm_to_vmem [thread:$0]  %s3410_s4, 192, %s68_s18, [#allocation9]  }
  0x37   :  { %2580 = dma.done.wait [#allocation3], 384  }
  0x38   :  { %2581 = vsyncadd [#allocation3], 4294966912 }
  0x39   :  { %2582 = dma.done.wait [#allocation6], 1152  }
  0x3a   :  { %2583 = vsyncadd [#allocation6], 4294966144 }
  0x3b   :  { %2584 = dma.done.wait [#allocation9], 384  }
  0x3c   :  { %2585 = vsyncadd [#allocation9], 4294966912  ;;  %v111_v0 = vlaneseq  ;;  %v2659_v4 = vld [vmem:[#allocation5] sm:$0xff]  ;;  %v2661_v5 = vld [vmem:[#allocation5 + $0x8] sm:$0xf]  ;;  %vm209_vm0 = vcmask 1041409  }
  0x3d   :  { %v2669_v9 = vld [vmem:[#allocation7] sm:$0xff]  ;;  %v2671_v10 = vld [vmem:[#allocation7 + $0x8] sm:$0xf]  ;;  %v2680_v16 = vld [vmem:[#allocation2 + $0x8] sm:$0xf]  ;;  %vm2332_vm1 = vcmask 1041408  }
  0x3e   :  { %v112_v1 = vshrl.u32 %v111_v0, 7  ;;  %v2682_v17 = vld [vmem:[#allocation2 + $0x14] sm:$0xf]  ;;  %v2692_v25 = vld [vmem:[#allocation8] sm:$0x77]  ;;  %v2698_v29 = vld [vmem:[#allocation2 + $0xc] sm:$0xff] }
  0x3f   :  { %v2694_v26 = vld [vmem:[#allocation8 + $0x8] sm:$0x7]  ;;  %v2696_v28 = vld [vmem:[#allocation2] sm:$0xff]  ;;  %v2721_v44 = vld [vmem:[#allocation10] sm:$0x77] }
  0x40   :  { %v2655_v2 = vsub.s32 0, %v112_v1  ;;  %v2657_v3 = vsub.s32 4, %v112_v1  ;;  %v2684_v19 = vsub.s32 1, %v112_v1  ;;  %v2686_v20 = vsub.s32 5, %v112_v1  ;;  %v2742_v61 = vld [vmem:[#allocation10 + $0x8] sm:$0x7] }
  0x41   :  { %v2702_v32 = vsub.s32 2, %v112_v1  ;;  %v2708_v36 = vsub.s32 6, %v112_v1  ;;  %v2717_v42 = vsub.s32 3, %v112_v1  ;;  %v2719_v43 = vsub.s32 7, %v112_v1 }
  0x42   :  { %v114_v6 = vrot.slane %v2659_v4, %v2655_v2  ;;  %v118_v7 = vrot.slane %v2659_v4, %v2657_v3  ;;  %v122_v8 = vrot.slane %v2661_v5, %v2655_v2  ;;  %v224_v14 = vrot.slane %v2669_v9, %v2655_v2 }
  0x43   :  { %v228_v15 = vrot.slane %v2669_v9, %v2657_v3  ;;  %v232_v22 = vrot.slane %v2671_v10, %v2655_v2  ;;  %v331_v34 = vrot.slane %v2659_v4, %v2684_v19  ;;  %v335_v35 = vrot.slane %v2659_v4, %v2686_v20 }
  0x44   :  { %v129_v11 = vrot.slane %v114_v6, %v2655_v2  ;;  %v133_v12 = vrot.slane %v118_v7, %v2655_v2  ;;  %v137_v13 = vrot.slane %v122_v8, %v2655_v2  ;;  %v239_v23 = vrot.slane %v224_v14, %v2655_v2 }
  0x45   :  { %v243_v24 = vrot.slane %v228_v15, %v2655_v2  ;;  %v157_v37 = vrot.slane %v2692_v25, %v2655_v2  ;;  %v165_v38 = vrot.slane %v2694_v26, %v2655_v2  ;;  %v247_v39 = vrot.slane %v232_v22, %v2655_v2 }
  0x46   :  { %v141_v18 = vcombine.low %v129_v11, %v133_v12  ;;  %v143_v21 = vrot.slane %v137_v13, 1  ;;  %v149_v30 = vmul.f32 %v137_v13, %v2680_v16  ;;  %v339_v47 = vrot.slane %v2661_v5, %v2684_v19 }
  0x47   :  { %v251_v33 = vcombine.low %v239_v23, %v243_v24  ;;  %v487_v48 = vrot.slane %v2659_v4, %v2702_v32  ;;  %v346_v50 = vrot.slane %v331_v34, %v2684_v19  ;;  %v350_v51 = vrot.slane %v335_v35, %v2684_v19 }
  0x48   :  { %v142_v27 = vrot.slane %v141_v18, 1  ;;  %v151_v31 = vmul.f32 %v143_v21, %v2682_v17  ;;  %v148_v40 = vmul.f32 %v141_v18, %v2696_v28  ;;  %v196_v45 = vrot.slane %v149_v30, %v2655_v2 }
  0x49   :  { %v252_v49 = vrot.slane %v251_v33, 1  ;;  %v491_v52 = vrot.slane %v2659_v4, %v2708_v36  ;;  %v161_v53 = vrot.slane %v2692_v25, %v2657_v3  ;;  %v172_v54 = vrot.slane %v157_v37, %v2655_v2 }
  0x4a   :  { %v150_v41 = vmul.f32 %v142_v27, %v2698_v29  ;;  %v208_v46 = vrot.slane %v151_v31, %v2655_v2  ;;  %v180_v55 = vrot.slane %v165_v38, %v2655_v2  ;;  %v253_v56 = vrot.slane %v247_v39, 1 }
  0x4b   :  { %v188_v57 = vrot.slane %v148_v40, %v2655_v2  ;;  %v192_v58 = vrot.slane %v148_v40, %v2657_v3  ;;  %v267_v60 = vrot.slane %v2721_v44, %v2655_v2  ;;  %v258_v0 = vmul.f32 %v251_v33, %v2696_v28 }
  0x4c   :  { %v200_v59 = vrot.slane %v150_v41, %v2655_v2  ;;  %v204_v62 = vrot.slane %v150_v41, %v2657_v3  ;;  %v212_v63 = vsel %vm209_vm0, %v208_v46, %v196_v45  ;;  %v354_v1 = vrot.slane %v339_v47, %v2684_v19 }
  0x4d   :  { %v260_v6 = vmul.f32 %v252_v49, %v2698_v29  ;;  %v358_v7 = vcombine.low %v346_v50, %v350_v51  ;;  %v409_v8 = vrot.slane %v2669_v9, %v2684_v19  ;;  %v413_v11 = vrot.slane %v2669_v9, %v2686_v20 }
  0x4e   :  { %v176_v12 = vrot.slane %v161_v53, %v2655_v2  ;;  %v259_v13 = vmul.f32 %v247_v39, %v2680_v16  ;;  %v261_v14 = vmul.f32 %v253_v56, %v2682_v17  ;;  %v360_v15 = vrot.slane %v354_v1, 7 }
  0x4f   :  { %v210_v18 = vsel %vm209_vm0, %v200_v59, %v188_v57  ;;  %v271_v21 = vrot.slane %v2721_v44, %v2657_v3  ;;  %v275_v22 = vrot.slane %v2742_v61, %v2655_v2  ;;  %v359_v23 = vrot.slane %v358_v7, 7 }
  0x50   :  { %v211_v24 = vsel %vm209_vm0, %v204_v62, %v192_v58  ;;  %v218_v27 = vadd.f32 %v212_v63, %v180_v55  ;;  %v282_v30 = vrot.slane %v267_v60, %v2655_v2  ;;  %v424_v31 = vrot.slane %v409_v8, %v2684_v19 }
  0x51   :  { %v298_v33 = vrot.slane %v258_v0, %v2655_v2  ;;  %v310_v34 = vrot.slane %v260_v6, %v2655_v2  ;;  %v417_v35 = vrot.slane %v2671_v10, %v2684_v19  ;;  %v428_v37 = vrot.slane %v413_v11, %v2684_v19 }
  0x52   :  { %v302_v38 = vrot.slane %v258_v0, %v2657_v3  ;;  %v306_v39 = vrot.slane %v259_v13, %v2655_v2  ;;  %v366_v40 = vmul.f32 %v360_v15, %v2680_v16  ;;  %v368_v41 = vmul.f32 %v354_v1, %v2682_v17 }
  0x53   :  { %v314_v45 = vrot.slane %v260_v6, %v2657_v3  ;;  %v365_v46 = vmul.f32 %v359_v23, %v2696_v28  ;;  %v367_v47 = vmul.f32 %v358_v7, %v2698_v29  ;;  %v495_v49 = vrot.slane %v2661_v5, %v2702_v32 }
  0x54   :  { %v318_v50 = vrot.slane %v261_v14, %v2655_v2  ;;  %v436_v51 = vcombine.low %v424_v31, %v428_v37  ;;  %v502_v53 = vrot.slane %v487_v48, %v2702_v32  ;;  %v506_v55 = vrot.slane %v491_v52, %v2702_v32 }
  0x55   :  { %v216_v56 = vadd.f32 %v210_v18, %v172_v54  ;;  %v217_v57 = vadd.f32 %v211_v24, %v176_v12  ;;  %v319_v58 = vsel %vm209_vm0, %v310_v34, %v298_v33  ;;  %v432_v59 = vrot.slane %v417_v35, %v2684_v19 }
  0x56   :  { %v286_v60 = vrot.slane %v271_v21, %v2655_v2  ;;  %v290_v62 = vrot.slane %v275_v22, %v2655_v2  ;;  %v384_v63 = vrot.slane %v366_v40, %v2684_v19  ;;  %v396_v0 = vrot.slane %v368_v41, %v2684_v19 }
  0x57   :  { %v376_v1 = vrot.slane %v365_v46, %v2684_v19  ;;  %v388_v48 = vrot.slane %v367_v47, %v2684_v19  ;;  %v510_v52 = vrot.slane %v495_v49, %v2702_v32  ;;  %v514_v54 = vcombine.low %v502_v53, %v506_v55 }
  0x58   :  { %v320_v6 = vsel %vm209_vm0, %v314_v45, %v302_v38  ;;  %v321_v7 = vsel %vm209_vm0, %v318_v50, %v306_v39  ;;  %v2792_v8 = vadd.f32 %v319_v58, %v282_v30  ;;  %v437_v11 = vrot.slane %v436_v51, 7 }
  0x59   :  { %v380_v12 = vrot.slane %v365_v46, %v2686_v20  ;;  %v392_v13 = vrot.slane %v367_v47, %v2686_v20  ;;  %v438_v14 = vrot.slane %v432_v59, 7  ;;  %v515_v15 = vrot.slane %v514_v54, 6 }
  0x5a   :  { %v399_v18 = vsel %vm209_vm0, %v396_v0, %v384_v63  ;;  %v516_v21 = vrot.slane %v510_v52, 6  ;;  %v517_v22 = vrot.slane %v514_v54, 7  ;;  %v567_v23 = vrot.slane %v2669_v9, %v2702_v32 }
  0x5b   :  { %v397_v24 = vsel %vm209_vm0, %v388_v48, %v376_v1  ;;  %v445_v31 = vmul.f32 %v436_v51, %v2698_v29  ;;  %v518_v30 = vrot.slane %v510_v52, 7  ;;  %v571_v33 = vrot.slane %v2669_v9, %v2708_v36 }
  0x5c   :  { %v2803_v34 = vadd.f32 %v320_v6, %v286_v60  ;;  %v2805_v35 = vadd.f32 %v321_v7, %v290_v62  ;;  %v443_v37 = vmul.f32 %v437_v11, %v2696_v28  ;;  %v2809_v38 = vmul.f32 %v432_v59, %v2682_v17 }
  0x5d   :  { %v398_v39 = vsel %vm209_vm0, %v392_v13, %v380_v12  ;;  %v405_v40 = vadd.f32 %v399_v18, %v218_v27  ;;  %v523_v41 = vmul.f32 %v515_v15, %v2696_v28  ;;  %v525_v45 = vmul.f32 %v517_v22, %v2698_v29 }
  0x5e   :  { %v403_v46 = vadd.f32 %v397_v24, %v216_v56  ;;  %v2815_v47 = vmul.f32 %v438_v14, %v2680_v16  ;;  %v524_v49 = vmul.f32 %v516_v21, %v2680_v16  ;;  %v582_v50 = vrot.slane %v567_v23, %v2702_v32 }
  0x5f   :  { %v466_v51 = vrot.slane %v445_v31, %v2684_v19  ;;  %v526_v53 = vmul.f32 %v518_v30, %v2682_v17  ;;  %v586_v55 = vrot.slane %v571_v33, %v2702_v32  ;;  %v647_v27 = vrot.slane %v2659_v4, %v2717_v42 }
  0x60   :  { %v454_v58 = vrot.slane %v443_v37, %v2684_v19  ;;  %v470_v56 = vrot.slane %v445_v31, %v2686_v20  ;;  %v651_v59 = vrot.slane %v2659_v4, %v2719_v43  ;;  %v655_v60 = vrot.slane %v2661_v5, %v2717_v42 }
  0x61   :  { %v458_v62 = vrot.slane %v443_v37, %v2686_v20  ;;  %v534_v63 = vrot.slane %v523_v41, %v2702_v32  ;;  %v546_v0 = vrot.slane %v525_v45, %v2702_v32  ;;  %v575_v1 = vrot.slane %v2671_v10, %v2702_v32 }
  0x62   :  { %v538_v48 = vrot.slane %v523_v41, %v2708_v36  ;;  %v542_v52 = vrot.slane %v524_v49, %v2702_v32  ;;  %v594_v54 = vcombine.low %v582_v50, %v586_v55  ;;  %v662_v6 = vrot.slane %v647_v27, %v2717_v42 }
  0x63   :  { %v550_v4 = vrot.slane %v525_v45, %v2708_v36  ;;  %v554_v5 = vrot.slane %v526_v53, %v2702_v32  ;;  %v666_v7 = vrot.slane %v651_v59, %v2717_v42  ;;  %v670_v11 = vrot.slane %v655_v60, %v2717_v42 }
  0x64   :  { %v404_v12 = vadd.f32 %v398_v39, %v217_v57  ;;  %v462_v13 = vrot.slane %v2815_v47, %v2684_v19  ;;  %v474_v14 = vrot.slane %v2809_v38, %v2684_v19  ;;  %v475_v15 = vsel %vm209_vm0, %v466_v51, %v454_v58 }
  0x65   :  { %v555_v18 = vsel %vm209_vm0, %v546_v0, %v534_v63  ;;  %v590_v21 = vrot.slane %v575_v1, %v2702_v32  ;;  %v674_v22 = vcombine.low %v662_v6, %v666_v7  ;;  %v676_v23 = vrot.slane %v670_v11, 5 }
  0x66   :  { %v476_v24 = vsel %vm209_vm0, %v470_v56, %v458_v62  ;;  %v595_v31 = vrot.slane %v594_v54, 6  ;;  %v597_v30 = vrot.slane %v594_v54, 7  ;;  %v678_v33 = vrot.slane %v670_v11, 6 }
  0x67   :  { %v556_v57 = vsel %vm209_vm0, %v550_v4, %v538_v48  ;;  %v557_v37 = vsel %vm209_vm0, %v554_v5, %v542_v52  ;;  %v727_v38 = vrot.slane %v2669_v9, %v2717_v42  ;;  %v731_v39 = vrot.slane %v2669_v9, %v2719_v43 }
  0x68   :  { %v561_v41 = vadd.f32 %v555_v18, %v403_v46  ;;  %v675_v45 = vrot.slane %v674_v22, 5  ;;  %v677_v47 = vrot.slane %v674_v22, 6  ;;  %v684_v49 = vmul.f32 %v676_v23, %v2680_v16 }
  0x69   :  { %v596_v50 = vrot.slane %v590_v21, 6  ;;  %v598_v51 = vrot.slane %v590_v21, 7  ;;  %v686_v53 = vmul.f32 %v678_v33, %v2682_v17  ;;  %v735_v55 = vrot.slane %v2671_v10, %v2717_v42 }
  0x6a   :  { %v603_v27 = vmul.f32 %v595_v31, %v2696_v28  ;;  %v605_v58 = vmul.f32 %v597_v30, %v2698_v29  ;;  %v683_v56 = vmul.f32 %v675_v45, %v2696_v28  ;;  %v685_v9 = vmul.f32 %v677_v47, %v2698_v29 }
  0x6b   :  { %v702_v46 = vrot.slane %v684_v49, %v2717_v42  ;;  %v714_v59 = vrot.slane %v686_v53, %v2717_v42  ;;  %v742_v60 = vrot.slane %v727_v38, %v2717_v42  ;;  %v746_v62 = vrot.slane %v731_v39, %v2717_v42 }
  0x6c   :  { %v562_v63 = vadd.f32 %v556_v57, %v404_v12  ;;  %v563_v0 = vadd.f32 %v557_v37, %v405_v40  ;;  %v694_v10 = vrot.slane %v683_v56, %v2717_v42  ;;  %v706_v1 = vrot.slane %v685_v9, %v2717_v42  ;;  %v2877_v40 = vld [vmem:[#allocation5 + $0xc] sm:$0xff] }
  0x6d   :  { %v698_v48 = vrot.slane %v683_v56, %v2719_v43  ;;  %v710_v52 = vrot.slane %v685_v9, %v2719_v43  ;;  %v750_v54 = vrot.slane %v735_v55, %v2717_v42  ;;  %v754_v6 = vcombine.low %v742_v60, %v746_v62 }
  0x6e   :  { %v604_v4 = vmul.f32 %v596_v50, %v2680_v16  ;;  %v606_v5 = vmul.f32 %v598_v51, %v2682_v17  ;;  %v614_v7 = vrot.slane %v603_v27, %v2702_v32  ;;  %v717_v11 = vsel %vm209_vm0, %v714_v59, %v702_v46  ;;  %v2891_v51 = vld [vmem:[#allocation5 + $0x14] sm:$0xf] }
  0x6f   :  { %v618_v12 = vrot.slane %v603_v27, %v2708_v36  ;;  %v626_v18 = vrot.slane %v605_v58, %v2702_v32  ;;  %v630_v21 = vrot.slane %v605_v58, %v2708_v36  ;;  %v755_v22 = vrot.slane %v754_v6, 5 }
  0x70   :  { %v715_v23 = vsel %vm209_vm0, %v706_v1, %v694_v10  ;;  %v756_v31 = vrot.slane %v750_v54, 5  ;;  %v757_v30 = vrot.slane %v754_v6, 6  ;;  %v758_v33 = vrot.slane %v750_v54, 6  ;;  %v2913_v54 = vld [vmem:[#allocation7 + $0xc] sm:$0xff] }
  0x71   :  { %v477_v57 = vsel %vm209_vm0, %v474_v14, %v462_v13  ;;  %v716_v37 = vsel %vm209_vm0, %v710_v52, %v698_v48  ;;  %v723_v38 = vadd.f32 %v717_v11, %v563_v0  ;;  %v763_v39 = vmul.f32 %v755_v22, %v2696_v28 }
  0x72   :  { %v481_v45 = vadd.f32 %v475_v15, %v2792_v8  ;;  %v482_v47 = vadd.f32 %v476_v24, %v2803_v34  ;;  %v765_v49 = vmul.f32 %v757_v30, %v2698_v29  ;;  %v867_v50 = vrot.slane %v2877_v40, %v2655_v2 }
  0x73   :  { %v622_v53 = vrot.slane %v604_v4, %v2702_v32  ;;  %v634_v13 = vrot.slane %v606_v5, %v2702_v32  ;;  %v635_v14 = vsel %vm209_vm0, %v626_v18, %v614_v7  ;;  %v721_v55 = vadd.f32 %v715_v23, %v561_v41 }
  0x74   :  { %v636_v27 = vsel %vm209_vm0, %v630_v21, %v618_v12  ;;  %v722_v58 = vadd.f32 %v716_v37, %v562_v63  ;;  %v764_v8 = vmul.f32 %v756_v31, %v2680_v16  ;;  %v766_v34 = vmul.f32 %v758_v33, %v2682_v17  ;;  %v2923_v31 = vld [vmem:[#allocation7 + $0x14] sm:$0xf] }
  0x75   :  { %v774_v15 = vrot.slane %v763_v39, %v2717_v42  ;;  %v786_v24 = vrot.slane %v765_v49, %v2717_v42  ;;  %v2360_v56 = vmul.f32 -1.442695, %v723_v38  ;;  %v871_v9 = vrot.slane %v2877_v40, %v2657_v3 }
  0x76   :  { %v778_v46 = vrot.slane %v763_v39, %v2719_v43  ;;  %v790_v59 = vrot.slane %v765_v49, %v2719_v43  ;;  %v875_v41 = vrot.slane %v2891_v51, %v2655_v2  ;;  %v882_v60 = vrot.slane %v867_v50, %v2655_v2 }
  0x77   :  { %v483_v62 = vadd.f32 %v477_v57, %v2805_v35  ;;  %v2358_v63 = vmul.f32 -1.442695, %v721_v55  ;;  %v886_v0 = vrot.slane %v871_v9, %v2655_v2  ;;  %v637_v10 = vsel %vm209_vm0, %v634_v13, %v622_v53 }
  0x78   :  { %v641_v1 = vadd.f32 %v635_v14, %v481_v45  ;;  %v782_v48 = vrot.slane %v764_v8, %v2717_v42  ;;  %v794_v52 = vrot.slane %v766_v34, %v2717_v42  ;;  %v642_v6 = vadd.f32 %v636_v27, %v482_v47 }
  0x79   :  { %v795_v4 = vsel %vm209_vm0, %v786_v24, %v774_v15  ;;  %v2359_v5 = vmul.f32 -1.442695, %v722_v58  ;;  %v796_v7 = vsel %vm209_vm0, %v790_v59, %v778_v46  ;;  %2384 = vpow2.f32 %v2360_v56 }
  0x7a   :  { %v890_v35 = vrot.slane %v875_v41, %v2655_v2  ;;  %v894_v11 = vcombine.low %v882_v60, %v886_v0  ;;  %v643_v12 = vadd.f32 %v637_v10, %v483_v62  ;;  %2386 = vpow2.f32 %v2358_v63 }
  0x7b   :  { %v797_v18 = vsel %vm209_vm0, %v794_v52, %v782_v48  ;;  %v801_v21 = vadd.f32 %v795_v4, %v641_v1  ;;  %v974_v22 = vrot.slane %v2913_v54, %v2655_v2  ;;  %v978_v23 = vrot.slane %v2913_v54, %v2657_v3 }
  0x7c   :  { %v802_v30 = vadd.f32 %v796_v7, %v642_v6  ;;  %2388 = vpow2.f32 %v2359_v5  ;;  %v895_v33 = vrot.slane %v894_v11, 1  ;;  %v896_v57 = vrot.slane %v890_v35, 1 }
  0x7d   :  { %v803_v37 = vadd.f32 %v797_v18, %v643_v12  ;;  %v908_v38 = vrot.slane %v2692_v25, %v2684_v19  ;;  %v2361_v39 = vmul.f32 -1.442695, %v801_v21  ;;  %v982_v45 = vrot.slane %v2923_v31, %v2655_v2 }
  0x7e   :  { %v989_v47 = vrot.slane %v974_v22, %v2655_v2  ;;  %v993_v49 = vrot.slane %v978_v23, %v2655_v2  ;;  %v2362_v50 = vmul.f32 -1.442695, %v802_v30  ;;  %v902_v53 = vmul.f32 %v890_v35, %v2680_v16 }
  0x7f   :  { %v912_v13 = vrot.slane %v2692_v25, %v2686_v20  ;;  %v916_v14 = vrot.slane %v2694_v26, %v2684_v19  ;;  %v901_v55 = vmul.f32 %v894_v11, %v2696_v28  ;;  %v903_v27 = vmul.f32 %v895_v33, %v2698_v29 }
  0x80   :  { %v904_v58 = vmul.f32 %v896_v57, %v2682_v17  ;;  %v2363_v8 = vmul.f32 -1.442695, %v803_v37  ;;  %2390 = vpow2.f32 %v2361_v39  ;;  %v923_v34 = vrot.slane %v908_v38, %v2684_v19 }
  0x81   :  { %v997_v15 = vrot.slane %v982_v45, %v2655_v2  ;;  %v1001_v24 = vcombine.low %v989_v47, %v993_v49  ;;  %2392 = vpow2.f32 %v2362_v50  ;;  %v927_v56 = vrot.slane %v912_v13, %v2684_v19 }
  0x82   :  { %v931_v9 = vrot.slane %v916_v14, %v2684_v19  ;;  %v947_v46 = vrot.slane %v902_v53, %v2655_v2  ;;  %v939_v59 = vrot.slane %v901_v55, %v2655_v2  ;;  %v951_v41 = vrot.slane %v903_v27, %v2655_v2 }
  0x83   :  { %v959_v60 = vrot.slane %v904_v58, %v2655_v2  ;;  %v1079_v62 = vrot.slane %v2877_v40, %v2684_v19  ;;  %2394 = vpow2.f32 %v2363_v8  ;;  %v943_v0 = vrot.slane %v901_v55, %v2657_v3 }
  0x84   :  { %v1083_v10 = vrot.slane %v2877_v40, %v2686_v20  ;;  %v1087_v1 = vrot.slane %v2891_v51, %v2684_v19  ;;  %v955_v52 = vrot.slane %v903_v27, %v2657_v3  ;;  %v1002_v6 = vrot.slane %v1001_v24, 1 }
  0x85   :  { %v1003_v4 = vrot.slane %v997_v15, 1  ;;  %v1094_v5 = vrot.slane %v1079_v62, %v2684_v19  ;;  %v1015_v7 = vrot.slane %v2721_v44, %v2684_v19  ;;  %v1019_v35 = vrot.slane %v2721_v44, %v2686_v20 }
  0x86   :  { %v2385_v63 = vpop.eup %2384  ;;  %v1157_v11 = vrot.slane %v2913_v54, %v2684_v19  ;;  %v1161_v12 = vrot.slane %v2913_v54, %v2686_v20  ;;  %v960_v21 = vsel %vm209_vm0, %v951_v41, %v939_v59  ;;  %v962_v22 = vsel %vm209_vm0, %v959_v60, %v947_v46 }
  0x87   :  { %v2387_v48 = vpop.eup %2386  ;;  %v2964_v18 = vadd.f32 1.0, %v2385_v63  ;;  %v1098_v23 = vrot.slane %v1083_v10, %v2684_v19  ;;  %v1008_v33 = vmul.f32 %v1001_v24, %v2696_v28  ;;  %v1009_v57 = vmul.f32 %v997_v15, %v2680_v16 }
  0x88   :  { %v1102_v37 = vrot.slane %v1087_v1, %v2684_v19  ;;  %v1165_v38 = vrot.slane %v2923_v31, %v2684_v19  ;;  %v2974_v39 = vadd.f32 1.0, %v2387_v48  ;;  %v1010_v45 = vmul.f32 %v1002_v6, %v2698_v29 }
  0x89   :  { %v2389_v30 = vpop.eup %2388  ;;  %v1011_v47 = vmul.f32 %v1003_v4, %v2682_v17  ;;  %v1106_v49 = vcombine.low %v1094_v5, %v1098_v23  ;;  %v961_v50 = vsel %vm209_vm0, %v955_v52, %v943_v0  ;;  %v1172_v13 = vrot.slane %v1157_v11, %v2684_v19 }
  0x8a   :  { %v1108_v53 = vrot.slane %v1102_v37, 7  ;;  %v1176_v14 = vrot.slane %v1161_v12, %v2684_v19  ;;  %v2981_v55 = vadd.f32 1.0, %v2389_v30  ;;  %v2983_v27 = vadd.f32 %v960_v21, %v923_v34 }
  0x8b   :  { %v2985_v58 = vadd.f32 %v962_v22, %v931_v9  ;;  %v1180_v8 = vrot.slane %v1165_v38, %v2684_v19  ;;  %v1023_v15 = vrot.slane %v2742_v61, %v2684_v19  ;;  %v1046_v24 = vrot.slane %v1008_v33, %v2655_v2 }
  0x8c   :  { %v1050_v46 = vrot.slane %v1008_v33, %v2657_v3  ;;  %v1054_v59 = vrot.slane %v1009_v57, %v2655_v2  ;;  %v1058_v41 = vrot.slane %v1010_v45, %v2655_v2  ;;  %v1062_v60 = vrot.slane %v1010_v45, %v2657_v3 }
  0x8d   :  { %v1066_v34 = vrot.slane %v1011_v47, %v2655_v2  ;;  %v1107_v62 = vrot.slane %v1106_v49, 7  ;;  %v2996_v9 = vpop.eup %2390  ;;  %v1114_v63 = vmul.f32 %v1108_v53, %v2680_v16  ;;  %v1115_v0 = vmul.f32 %v1106_v49, %v2698_v29 }
  0x8e   :  { %v1116_v10 = vmul.f32 %v1102_v37, %v2682_v17  ;;  %v1184_v1 = vcombine.low %v1172_v13, %v1176_v14  ;;  %v3001_v48 = vpop.eup %2392  ;;  %v967_v52 = vadd.f32 %v961_v50, %v927_v56  ;;  %v1030_v6 = vrot.slane %v1015_v7, %v2684_v19 }
  0x8f   :  { %v1186_v4 = vrot.slane %v1180_v8, 7  ;;  %v1235_v5 = vrot.slane %v2877_v40, %v2702_v32  ;;  %v1034_v11 = vrot.slane %v1019_v35, %v2684_v19  ;;  %v1038_v12 = vrot.slane %v1023_v15, %v2684_v19 }
  0x90   :  { %v1194_v21 = vmul.f32 %v1180_v8, %v2682_v17  ;;  %v1239_v22 = vrot.slane %v2877_v40, %v2708_v36  ;;  %v3011_v23 = vpop.eup %2394  ;;  %v1067_v30 = vsel %vm209_vm0, %v1058_v41, %v1046_v24  ;;  %v1068_v56 = vsel %vm209_vm0, %v1062_v60, %v1050_v46 }
  0x91   :  { %v1069_v7 = vsel %vm209_vm0, %v1066_v34, %v1054_v59  ;;  %v1113_v33 = vmul.f32 %v1107_v62, %v2696_v28  ;;  %v1132_v57 = vrot.slane %v1114_v63, %v2684_v19  ;;  %v1136_v35 = vrot.slane %v1115_v0, %v2684_v19 }
  0x92   :  { %v1144_v37 = vrot.slane %v1116_v10, %v2684_v19  ;;  %v1185_v38 = vrot.slane %v1184_v1, 7  ;;  %v1192_v45 = vmul.f32 %v1186_v4, %v2680_v16  ;;  %v1193_v47 = vmul.f32 %v1184_v1, %v2698_v29 }
  0x93   :  { %v1243_v49 = vrot.slane %v2891_v51, %v2702_v32  ;;  %v1250_v50 = vrot.slane %v1235_v5, %v2702_v32  ;;  %v1140_v53 = vrot.slane %v1115_v0, %v2686_v20  ;;  %v1222_v13 = vrot.slane %v1194_v21, %v2684_v19 }
  0x94   :  { %v1254_v14 = vrot.slane %v1239_v22, %v2702_v32  ;;  %v1315_v8 = vrot.slane %v2913_v54, %v2702_v32  ;;  %v1124_v15 = vrot.slane %v1113_v33, %v2684_v19  ;;  %v1128_v24 = vrot.slane %v1113_v33, %v2686_v20 }
  0x95   :  { %v1258_v46 = vrot.slane %v1243_v49, %v2702_v32  ;;  %v1319_v59 = vrot.slane %v2913_v54, %v2708_v36  ;;  %v1147_v41 = vsel %vm209_vm0, %v1144_v37, %v1132_v57  ;;  %v1191_v60 = vmul.f32 %v1185_v38, %v2696_v28 }
  0x96   :  { %v1262_v34 = vcombine.low %v1250_v50, %v1254_v14  ;;  %v1323_v62 = vrot.slane %v2923_v31, %v2702_v32  ;;  %v1210_v63 = vrot.slane %v1192_v45, %v2684_v19  ;;  %v1214_v0 = vrot.slane %v1193_v47, %v2684_v19 }
  0x97   :  { %v1264_v10 = vrot.slane %v1258_v46, 6  ;;  %v1266_v1 = vrot.slane %v1258_v46, 7  ;;  %v1330_v21 = vrot.slane %v1315_v8, %v2702_v32  ;;  %v1334_v22 = vrot.slane %v1319_v59, %v2702_v32 }
  0x98   :  { %v1263_v4 = vrot.slane %v1262_v34, 6  ;;  %v1265_v5 = vrot.slane %v1262_v34, 7  ;;  %v1145_v33 = vsel %vm209_vm0, %v1136_v35, %v1124_v15  ;;  %v1218_v57 = vrot.slane %v1193_v47, %v2686_v20 }
  0x99   :  { %v1272_v37 = vmul.f32 %v1264_v10, %v2680_v16  ;;  %v1274_v38 = vmul.f32 %v1266_v1, %v2682_v17  ;;  %v1146_v45 = vsel %vm209_vm0, %v1140_v53, %v1128_v24  ;;  %v1202_v49 = vrot.slane %v1191_v60, %v2684_v19 }
  0x9a   :  { %v1206_v50 = vrot.slane %v1191_v60, %v2686_v20  ;;  %v1338_v14 = vrot.slane %v1323_v62, %v2702_v32  ;;  %v1073_v46 = vadd.f32 %v1067_v30, %v1030_v6  ;;  %v1075_v8 = vadd.f32 %v1069_v7, %v1038_v12 }
  0x9b   :  { %v1271_v59 = vmul.f32 %v1263_v4, %v2696_v28  ;;  %v1273_v35 = vmul.f32 %v1265_v5, %v2698_v29  ;;  %v1074_v15 = vadd.f32 %v1068_v56, %v1034_v11  ;;  %v3054_v47 = vadd.f32 %v1145_v33, %v2983_v27 }
  0x9c   :  { %v1153_v34 = vadd.f32 %v1147_v41, %v2985_v58  ;;  %v1342_v10 = vcombine.low %v1330_v21, %v1334_v22  ;;  %v3057_v53 = vadd.f32 %v1146_v45, %v967_v52  ;;  %v1225_v24 = vsel %vm209_vm0, %v1222_v13, %v1210_v63 }
  0x9d   :  { %v1290_v60 = vrot.slane %v1272_v37, %v2702_v32  ;;  %v1302_v6 = vrot.slane %v1274_v38, %v2702_v32  ;;  %v1223_v12 = vsel %vm209_vm0, %v1214_v0, %v1202_v49  ;;  %v1224_v30 = vsel %vm209_vm0, %v1218_v57, %v1206_v50 }
  0x9e   :  { %v1344_v7 = vrot.slane %v1338_v14, 6  ;;  %v1395_v27 = vrot.slane %v2877_v40, %v2717_v42  ;;  %v1282_v11 = vrot.slane %v1271_v59, %v2702_v32  ;;  %v1286_v58 = vrot.slane %v1271_v59, %v2708_v36 }
  0x9f   :  { %v1294_v52 = vrot.slane %v1273_v35, %v2702_v32  ;;  %v1298_v56 = vrot.slane %v1273_v35, %v2708_v36  ;;  %v1343_v13 = vrot.slane %v1342_v10, 6  ;;  %v1346_v41 = vrot.slane %v1338_v14, 7 }
  0xa0   :  { %v1399_v62 = vrot.slane %v2877_v40, %v2719_v43  ;;  %v1403_v63 = vrot.slane %v2891_v51, %v2717_v42  ;;  %v3074_v0 = vadd.f32 %v1223_v12, %v1073_v46  ;;  %v3076_v1 = vadd.f32 %v1224_v30, %v1074_v15 }
  0xa1   :  { %v3078_v4 = vadd.f32 %v1225_v24, %v1075_v8  ;;  %v1305_v5 = vsel %vm209_vm0, %v1302_v6, %v1290_v60  ;;  %v1345_v21 = vrot.slane %v1342_v10, 7  ;;  %v1410_v22 = vrot.slane %v1395_v27, %v2717_v42  ;;  %v3098_v6 = vld [vmem:[#allocation5 + $0x18] sm:$0xff] }
  0xa2   :  { %v1414_v33 = vrot.slane %v1399_v62, %v2717_v42  ;;  %v1418_v57 = vrot.slane %v1403_v63, %v2717_v42  ;;  %v1303_v40 = vsel %vm209_vm0, %v1294_v52, %v1282_v11  ;;  %v1304_v37 = vsel %vm209_vm0, %v1298_v56, %v1286_v58 }
  0xa3   :  { %v1352_v51 = vmul.f32 %v1344_v7, %v2680_v16  ;;  %v1475_v38 = vrot.slane %v2913_v54, %v2717_v42  ;;  %v1351_v45 = vmul.f32 %v1343_v13, %v2696_v28  ;;  %v1354_v49 = vmul.f32 %v1346_v41, %v2682_v17 }
  0xa4   :  { %v1422_v50 = vcombine.low %v1410_v22, %v1414_v33  ;;  %v1424_v14 = vrot.slane %v1418_v57, 5  ;;  %v1426_v46 = vrot.slane %v1418_v57, 6  ;;  %v1479_v8 = vrot.slane %v2913_v54, %v2719_v43 }
  0xa5   :  { %v1483_v59 = vrot.slane %v2923_v31, %v2717_v42  ;;  %v1490_v35 = vrot.slane %v1475_v38, %v2717_v42  ;;  %v1353_v15 = vmul.f32 %v1345_v21, %v2698_v29  ;;  %v1311_v12 = vadd.f32 %v1305_v5, %v1153_v34  ;;  %v3113_v21 = vld [vmem:[#allocation5 + $0x20] sm:$0xf] }
  0xa6   :  { %v1423_v10 = vrot.slane %v1422_v50, 5  ;;  %v1425_v24 = vrot.slane %v1422_v50, 6  ;;  %v1432_v60 = vmul.f32 %v1424_v14, %v2680_v16  ;;  %v1434_v30 = vmul.f32 %v1426_v46, %v2682_v17 }
  0xa7   :  { %v1494_v7 = vrot.slane %v1479_v8, %v2717_v42  ;;  %v1498_v54 = vrot.slane %v1483_v59, %v2717_v42  ;;  %v1370_v27 = vrot.slane %v1352_v51, %v2702_v32  ;;  %v1362_v34 = vrot.slane %v1351_v45, %v2702_v32 }
  0xa8   :  { %v1431_v31 = vmul.f32 %v1423_v10, %v2696_v28  ;;  %v1433_v11 = vmul.f32 %v1425_v24, %v2698_v29  ;;  %v1450_v58 = vrot.slane %v1432_v60, %v2717_v42  ;;  %v1462_v52 = vrot.slane %v1434_v30, %v2717_v42 }
  0xa9   :  { %v1502_v56 = vcombine.low %v1490_v35, %v1494_v7  ;;  %v1504_v13 = vrot.slane %v1498_v54, 5  ;;  %v1506_v41 = vrot.slane %v1498_v54, 6  ;;  %v1374_v62 = vrot.slane %v1353_v15, %v2702_v32 }
  0xaa   :  { %v1382_v63 = vrot.slane %v1354_v49, %v2702_v32  ;;  %v1602_v5 = vrot.slane %v3098_v6, %v2655_v2  ;;  %v1442_v22 = vrot.slane %v1431_v31, %v2717_v42  ;;  %v1454_v33 = vrot.slane %v1433_v11, %v2717_v42 }
  0xab   :  { %v1503_v57 = vrot.slane %v1502_v56, 5  ;;  %v1505_v51 = vrot.slane %v1502_v56, 6  ;;  %v1446_v38 = vrot.slane %v1431_v31, %v2719_v43  ;;  %v1458_v50 = vrot.slane %v1433_v11, %v2719_v43 }
  0xac   :  { %v1512_v14 = vmul.f32 %v1504_v13, %v2680_v16  ;;  %v1514_v46 = vmul.f32 %v1506_v41, %v2682_v17  ;;  %v1465_v49 = vsel %vm209_vm0, %v1462_v52, %v1450_v58  ;;  %v1606_v35 = vrot.slane %v3098_v6, %v2657_v3 }
  0xad   :  { %v1511_v8 = vmul.f32 %v1503_v57, %v2696_v28  ;;  %v1513_v59 = vmul.f32 %v1505_v51, %v2698_v29  ;;  %v1309_v10 = vadd.f32 %v1303_v40, %v3054_v47  ;;  %v1366_v24 = vrot.slane %v1351_v45, %v2708_v36  ;;  %v3152_v51 = vld [vmem:[#allocation7 + $0x18] sm:$0xff] }
  0xae   :  { %v1378_v60 = vrot.slane %v1353_v15, %v2708_v36  ;;  %v1610_v30 = vrot.slane %v3113_v21, %v2655_v2  ;;  %v1310_v7 = vadd.f32 %v1304_v37, %v3057_v53  ;;  %v1385_v54 = vsel %vm209_vm0, %v1382_v63, %v1370_v27 }
  0xaf   :  { %v1463_v31 = vsel %vm209_vm0, %v1454_v33, %v1442_v22  ;;  %v1617_v11 = vrot.slane %v1602_v5, %v2655_v2  ;;  %v1464_v58 = vsel %vm209_vm0, %v1458_v50, %v1446_v38  ;;  %v1471_v52 = vadd.f32 %v1465_v49, %v1311_v12 }
  0xb0   :  { %v1530_v47 = vrot.slane %v1512_v14, %v2717_v42  ;;  %v1542_v40 = vrot.slane %v1514_v46, %v2717_v42  ;;  %v1383_v45 = vsel %vm209_vm0, %v1374_v62, %v1362_v34  ;;  %v1522_v15 = vrot.slane %v1511_v8, %v2717_v42  ;;  %v3156_v14 = vld [vmem:[#allocation7 + $0x20] sm:$0xf] }
  0xb1   :  { %v1534_v56 = vrot.slane %v1513_v59, %v2717_v42  ;;  %v1621_v53 = vrot.slane %v1606_v35, %v2655_v2  ;;  %v1384_v37 = vsel %vm209_vm0, %v1378_v60, %v1366_v24  ;;  %v1391_v27 = vadd.f32 %v1385_v54, %v3078_v4 }
  0xb2   :  { %v1469_v13 = vadd.f32 %v1463_v31, %v1309_v10  ;;  %v1625_v41 = vrot.slane %v1610_v30, %v2655_v2  ;;  %v1470_v12 = vadd.f32 %v1464_v58, %v1310_v7  ;;  %v1526_v63 = vrot.slane %v1511_v8, %v2719_v43 }
  0xb3   :  { %v1538_v5 = vrot.slane %v1513_v59, %v2719_v43  ;;  %v1629_v22 = vcombine.low %v1617_v11, %v1621_v53  ;;  %2396 = vrcp.f32 %v2964_v18  ;;  %v1389_v34 = vadd.f32 %v1383_v45, %v3074_v0 }
  0xb4   :  { %v1545_v62 = vsel %vm209_vm0, %v1542_v40, %v1530_v47  ;;  %v2366_v33 = vmul.f32 -1.442695, %v1471_v52  ;;  %2398 = vrcp.f32 %v2974_v39  ;;  %v1543_v4 = vsel %vm209_vm0, %v1534_v56, %v1522_v15 }
  0xb5   :  { %v1631_v57 = vrot.slane %v1625_v41, 1  ;;  %2400 = vrcp.f32 %v2981_v55  ;;  %v1390_v38 = vadd.f32 %v1384_v37, %v3076_v1  ;;  %v2364_v50 = vmul.f32 -1.442695, %v1469_v13 }
  0xb6   :  { %v1544_v18 = vsel %vm209_vm0, %v1538_v5, %v1526_v63  ;;  %v1551_v0 = vadd.f32 %v1545_v62, %v1391_v27  ;;  %v2365_v46 = vmul.f32 -1.442695, %v1470_v12  ;;  %v1630_v49 = vrot.slane %v1629_v22, 1 }
  0xb7   :  { %v1549_v8 = vadd.f32 %v1543_v4, %v1389_v34  ;;  %2402 = vpow2.f32 %v2366_v33  ;;  %v1637_v39 = vmul.f32 %v1625_v41, %v2680_v16  ;;  %v1639_v59 = vmul.f32 %v1631_v57, %v2682_v17 }
  0xb8   :  { %v1709_v35 = vrot.slane %v3152_v51, %v2655_v2  ;;  %v1713_v55 = vrot.slane %v3152_v51, %v2657_v3  ;;  %v1550_v1 = vadd.f32 %v1544_v18, %v1390_v38  ;;  %2404 = vpow2.f32 %v2364_v50 }
  0xb9   :  { %v1636_v10 = vmul.f32 %v1629_v22, %v2696_v28  ;;  %v1717_v24 = vrot.slane %v3156_v14, %v2655_v2  ;;  %2406 = vpow2.f32 %v2365_v46  ;;  %v2369_v60 = vmul.f32 -1.442695, %v1551_v0  ;;  %v3211_v46 = vld [vmem:[#allocation2] sm:$0xff] }
  0xba   :  { %v1638_v30 = vmul.f32 %v1630_v49, %v2698_v29  ;;  %v1724_v16 = vrot.slane %v1709_v35, %v2655_v2  ;;  %v2367_v17 = vmul.f32 -1.442695, %v1549_v8  ;;  %v1643_v7 = vrot.slane %v2692_v25, %v2702_v32  ;;  %v3214_v8 = vld [vmem:[#allocation2 + $0x8] sm:$0xf] }
  0xbb   :  { %v1647_v54 = vrot.slane %v2692_v25, %v2708_v36  ;;  %v1728_v31 = vrot.slane %v1713_v55, %v2655_v2  ;;  %v1651_v28 = vrot.slane %v2694_v26, %v2702_v32  ;;  %v1682_v11 = vrot.slane %v1637_v39, %v2655_v2 }
  0xbc   :  { %v1694_v58 = vrot.slane %v1639_v59, %v2655_v2  ;;  %v1814_v29 = vrot.slane %v3098_v6, %v2684_v19  ;;  %v1674_v52 = vrot.slane %v1636_v10, %v2655_v2  ;;  %v1678_v47 = vrot.slane %v1636_v10, %v2657_v3 }
  0xbd   :  { %v1732_v40 = vrot.slane %v1717_v24, %v2655_v2  ;;  %v1736_v45 = vcombine.low %v1724_v16, %v1728_v31  ;;  %v1686_v25 = vrot.slane %v1638_v30, %v2655_v2  ;;  %v1690_v15 = vrot.slane %v1638_v30, %v2657_v3  ;;  %v3228_v24 = vld [vmem:[#allocation2 + $0xc] sm:$0xff]  ;;  %v3231_v30 = vld [vmem:[#allocation2 + $0x14] sm:$0xf] }
  0xbe   :  { %v1818_v26 = vrot.slane %v3098_v6, %v2686_v20  ;;  %v1822_v56 = vrot.slane %v3113_v21, %v2684_v19  ;;  %v2368_v53 = vmul.f32 -1.442695, %v1550_v1  ;;  %2408 = vpow2.f32 %v2369_v60 }
  0xbf   :  { %v1658_v37 = vrot.slane %v1643_v7, %v2702_v32  ;;  %v1829_v27 = vrot.slane %v1814_v29, %v2684_v19  ;;  %v1662_v41 = vrot.slane %v1647_v54, %v2702_v32  ;;  %v1666_v12 = vrot.slane %v1651_v28, %v2702_v32 }
  0xc0   :  { %v3192_v13 = vpop.eup %2396  ;;  %v1697_v63 = vsel %vm209_vm0, %v1694_v58, %v1682_v11  ;;  %v1833_v5 = vrot.slane %v1818_v26, %v2684_v19  ;;  %v1737_v34 = vrot.slane %v1736_v45, 1  ;;  %v1738_v62 = vrot.slane %v1732_v40, 1 }
  0xc1   :  { %v3198_v22 = vpop.eup %2398  ;;  %v1750_v33 = vrot.slane %v2721_v44, %v2702_v32  ;;  %v1754_v4 = vrot.slane %v2721_v44, %v2708_v36  ;;  %v1695_v38 = vsel %vm209_vm0, %v1686_v25, %v1674_v52  ;;  %v1696_v50 = vsel %vm209_vm0, %v1690_v15, %v1678_v47 }
  0xc2   :  { %v3204_v57 = vpop.eup %2400  ;;  %v1758_v18 = vrot.slane %v2742_v61, %v2702_v32  ;;  %v1837_v0 = vrot.slane %v1822_v56, %v2684_v19  ;;  %2410 = vpow2.f32 %v2367_v17  ;;  %v1743_v49 = vmul.f32 %v3211_v46, %v1736_v45 }
  0xc3   :  { %v1744_v44 = vmul.f32 %v3214_v8, %v1732_v40  ;;  %v1841_v39 = vcombine.low %v1829_v27, %v1833_v5  ;;  %v3220_v35 = vadd.f32 1.0, %v2996_v9  ;;  %2412 = vpow2.f32 %v2368_v53 }
  0xc4   :  { %v3217_v59 = vpop.eup %2402  ;;  %v3222_v55 = vadd.f32 %v1697_v63, %v1666_v12  ;;  %v1843_v61 = vrot.slane %v1837_v0, 7  ;;  %v3224_v1 = vadd.f32 %v1695_v38, %v1658_v37  ;;  %v3226_v10 = vadd.f32 %v1696_v50, %v1662_v41 }
  0xc5   :  { %v1745_v60 = vmul.f32 %v3228_v24, %v1737_v34  ;;  %v1746_v16 = vmul.f32 %v3231_v30, %v1738_v62  ;;  %v3234_v17 = vpop.eup %2404  ;;  %v1765_v9 = vrot.slane %v1750_v33, %v2702_v32  ;;  %v1769_v7 = vrot.slane %v1754_v4, %v2702_v32 }
  0xc6   :  { %v1773_v54 = vrot.slane %v1758_v18, %v2702_v32  ;;  %v1842_v31 = vrot.slane %v1841_v39, 7  ;;  %v3239_v28 = vpop.eup %2406  ;;  %v1781_v11 = vrot.slane %v1743_v49, %v2655_v2  ;;  %v1789_v58 = vrot.slane %v1744_v44, %v2655_v2 }
  0xc7   :  { %v1849_v29 = vmul.f32 %v3214_v8, %v1843_v61  ;;  %v1892_v52 = vrot.slane %v3152_v51, %v2684_v19  ;;  %v1850_v47 = vmul.f32 %v3228_v24, %v1841_v39  ;;  %v1851_v40 = vmul.f32 %v3231_v30, %v1837_v0 }
  0xc8   :  { %v1896_v45 = vrot.slane %v3152_v51, %v2686_v20  ;;  %v1900_v25 = vrot.slane %v3156_v14, %v2684_v19  ;;  %v1785_v15 = vrot.slane %v1743_v49, %v2657_v3  ;;  %v1793_v26 = vrot.slane %v1745_v60, %v2655_v2 }
  0xc9   :  { %v1801_v56 = vrot.slane %v1746_v16, %v2655_v2  ;;  %v1848_v53 = vmul.f32 %v3211_v46, %v1842_v31  ;;  %v1797_v37 = vrot.slane %v1745_v60, %v2657_v3  ;;  %v1907_v27 = vrot.slane %v1892_v52, %v2684_v19 }
  0xca   :  { %v1911_v41 = vrot.slane %v1896_v45, %v2684_v19  ;;  %v1970_v12 = vrot.slane %v3098_v6, %v2702_v32  ;;  %v1867_v63 = vrot.slane %v1849_v29, %v2684_v19  ;;  %v1915_v5 = vrot.slane %v1900_v25, %v2684_v19 }
  0xcb   :  { %v1974_v34 = vrot.slane %v3098_v6, %v2708_v36  ;;  %v1978_v62 = vrot.slane %v3113_v21, %v2702_v32  ;;  %v3267_v33 = vpop.eup %2408  ;;  %v1871_v3 = vrot.slane %v1850_v47, %v2684_v19  ;;  %v1875_v4 = vrot.slane %v1850_v47, %v2686_v20 }
  0xcc   :  { %v1879_v38 = vrot.slane %v1851_v40, %v2684_v19  ;;  %v1919_v50 = vcombine.low %v1907_v27, %v1911_v41  ;;  %v1859_v18 = vrot.slane %v1848_v53, %v2684_v19  ;;  %v1863_v0 = vrot.slane %v1848_v53, %v2686_v20 }
  0xcd   :  { %v1921_v49 = vrot.slane %v1915_v5, 7  ;;  %v1929_v44 = vmul.f32 %v3231_v30, %v1915_v5  ;;  %v1985_v60 = vrot.slane %v1970_v12, %v2702_v32  ;;  %v1989_v16 = vrot.slane %v1974_v34, %v2702_v32 }
  0xce   :  { %v1920_v39 = vrot.slane %v1919_v50, 7  ;;  %v1928_v61 = vmul.f32 %v3228_v24, %v1919_v50  ;;  %v1802_v31 = vsel %vm209_vm0, %v1793_v26, %v1781_v11  ;;  %v1804_v29 = vsel %vm209_vm0, %v1801_v56, %v1789_v58 }
  0xcf   :  { %v1927_v52 = vmul.f32 %v3214_v8, %v1921_v49  ;;  %v1993_v47 = vrot.slane %v1978_v62, %v2702_v32  ;;  %v3282_v40 = vpop.eup %2410  ;;  %v1803_v45 = vsel %vm209_vm0, %v1797_v37, %v1785_v15  ;;  %v1882_v25 = vsel %vm209_vm0, %v1879_v38, %v1867_v63 }
  0xd0   :  { %v1926_v53 = vmul.f32 %v3211_v46, %v1920_v39  ;;  %v1997_v27 = vcombine.low %v1985_v60, %v1989_v16  ;;  %v3287_v41 = vpop.eup %2412  ;;  %v1880_v12 = vsel %vm209_vm0, %v1871_v3, %v1859_v18  ;;  %v1881_v11 = vsel %vm209_vm0, %v1875_v4, %v1863_v0 }
  0xd1   :  { %v1957_v58 = vrot.slane %v1929_v44, %v2684_v19  ;;  %v1999_v26 = vrot.slane %v1993_v47, 6  ;;  %v1945_v56 = vrot.slane %v1927_v52, %v2684_v19  ;;  %v1949_v5 = vrot.slane %v1928_v61, %v2684_v19 }
  0xd2   :  { %v1953_v15 = vrot.slane %v1928_v61, %v2686_v20  ;;  %v1998_v37 = vrot.slane %v1997_v27, 6  ;;  %v1937_v63 = vrot.slane %v1926_v53, %v2684_v19  ;;  %v1941_v34 = vrot.slane %v1926_v53, %v2686_v20 }
  0xd3   :  { %v2000_v62 = vrot.slane %v1997_v27, 7  ;;  %v2001_v38 = vrot.slane %v1993_v47, 7  ;;  %v1808_v50 = vadd.f32 %v1802_v31, %v1765_v9  ;;  %v1809_v3 = vadd.f32 %v1803_v45, %v1769_v7 }
  0xd4   :  { %v1810_v18 = vadd.f32 %v1804_v29, %v1773_v54  ;;  %v2007_v4 = vmul.f32 %v3214_v8, %v1999_v26  ;;  %v1886_v0 = vadd.f32 %v1880_v12, %v3224_v1  ;;  %v1888_v49 = vadd.f32 %v1882_v25, %v3222_v55 }
  0xd5   :  { %v2050_v44 = vrot.slane %v3152_v51, %v2702_v32  ;;  %v2054_v39 = vrot.slane %v3152_v51, %v2708_v36  ;;  %v1887_v61 = vadd.f32 %v1881_v11, %v3226_v10  ;;  %v1960_v20 = vsel %vm209_vm0, %v1957_v58, %v1945_v56 }
  0xd6   :  { %v2006_v9 = vmul.f32 %v3211_v46, %v1998_v37  ;;  %v2008_v7 = vmul.f32 %v3228_v24, %v2000_v62  ;;  %v1958_v54 = vsel %vm209_vm0, %v1949_v5, %v1937_v63  ;;  %v1959_v1 = vsel %vm209_vm0, %v1953_v15, %v1941_v34 }
  0xd7   :  { %v2009_v55 = vmul.f32 %v3231_v30, %v2001_v38  ;;  %v2058_v60 = vrot.slane %v3156_v14, %v2702_v32  ;;  %v2025_v10 = vrot.slane %v2007_v4, %v2702_v32  ;;  %v2065_v45 = vrot.slane %v2050_v44, %v2702_v32 }
  0xd8   :  { %v2017_v16 = vrot.slane %v2006_v9, %v2702_v32  ;;  %v2021_v31 = vrot.slane %v2006_v9, %v2708_v36  ;;  %v2029_v29 = vrot.slane %v2008_v7, %v2702_v32  ;;  %v2033_v52 = vrot.slane %v2008_v7, %v2708_v36 }
  0xd9   :  { %v2037_v47 = vrot.slane %v2009_v55, %v2702_v32  ;;  %v2069_v25 = vrot.slane %v2054_v39, %v2702_v32  ;;  %v1964_v53 = vadd.f32 %v1958_v54, %v1808_v50  ;;  %v2073_v27 = vrot.slane %v2058_v60, %v2702_v32 }
  0xda   :  { %v2130_v12 = vrot.slane %v3098_v6, %v2717_v42  ;;  %v2134_v11 = vrot.slane %v3098_v6, %v2719_v43  ;;  %v3326_v58 = vadd.f32 %v1959_v1, %v1809_v3  ;;  %v1966_v26 = vadd.f32 %v1960_v20, %v1810_v18 }
  0xdb   :  { %v2038_v56 = vsel %vm209_vm0, %v2029_v29, %v2017_v16  ;;  %v2077_v5 = vcombine.low %v2065_v45, %v2069_v25  ;;  %v2039_v15 = vsel %vm209_vm0, %v2033_v52, %v2021_v31  ;;  %v2040_v37 = vsel %vm209_vm0, %v2037_v47, %v2025_v10 }
  0xdc   :  { %v2079_v63 = vrot.slane %v2073_v27, 6  ;;  %v2081_v34 = vrot.slane %v2073_v27, 7  ;;  %v2138_v50 = vrot.slane %v3113_v21, %v2717_v42  ;;  %v2145_v4 = vrot.slane %v2130_v12, %v2717_v42 }
  0xdd   :  { %v2078_v62 = vrot.slane %v2077_v5, 6  ;;  %v2080_v38 = vrot.slane %v2077_v5, 7  ;;  %v2044_v6 = vadd.f32 %v2038_v56, %v1886_v0  ;;  %v2149_v44 = vrot.slane %v2134_v11, %v2717_v42 }
  0xde   :  { %v2087_v3 = vmul.f32 %v3214_v8, %v2079_v63  ;;  %v2089_v18 = vmul.f32 %v3231_v30, %v2081_v34  ;;  %v2153_v9 = vrot.slane %v2138_v50, %v2717_v42  ;;  %v2210_v7 = vrot.slane %v3152_v51, %v2717_v42 }
  0xdf   :  { %v2086_v39 = vmul.f32 %v3211_v46, %v2078_v62  ;;  %v2088_v20 = vmul.f32 %v3228_v24, %v2080_v38  ;;  %v2157_v0 = vcombine.low %v2145_v4, %v2149_v44  ;;  %v2214_v1 = vrot.slane %v3152_v51, %v2719_v43 }
  0xe0   :  { %v2105_v21 = vrot.slane %v2087_v3, %v2702_v32  ;;  %v2117_v54 = vrot.slane %v2089_v18, %v2702_v32  ;;  %v2159_v29 = vrot.slane %v2153_v9, 5  ;;  %v2218_v47 = vrot.slane %v3156_v14, %v2717_v42 }
  0xe1   :  { %v2097_v55 = vrot.slane %v2086_v39, %v2702_v32  ;;  %v2101_v60 = vrot.slane %v2086_v39, %v2708_v36  ;;  %v2109_v16 = vrot.slane %v2088_v20, %v2702_v32  ;;  %v2113_v31 = vrot.slane %v2088_v20, %v2708_v36 }
  0xe2   :  { %v2158_v10 = vrot.slane %v2157_v0, 5  ;;  %v2160_v52 = vrot.slane %v2157_v0, 6  ;;  %v2045_v45 = vadd.f32 %v2039_v15, %v1887_v61  ;;  %v2046_v25 = vadd.f32 %v2040_v37, %v1888_v49 }
  0xe3   :  { %v2120_v27 = vsel %vm209_vm0, %v2117_v54, %v2105_v21  ;;  %v2161_v12 = vrot.slane %v2153_v9, 6  ;;  %v2118_v51 = vsel %vm209_vm0, %v2109_v16, %v2097_v55  ;;  %v2119_v11 = vsel %vm209_vm0, %v2113_v31, %v2101_v60 }
  0xe4   :  { %v2166_v56 = vmul.f32 %v3211_v46, %v2158_v10  ;;  %v2167_v5 = vmul.f32 %v3214_v8, %v2159_v29  ;;  %v2168_v36 = vmul.f32 %v3228_v24, %v2160_v52  ;;  %v2225_v34 = vrot.slane %v2210_v7, %v2717_v42 }
  0xe5   :  { %v2169_v63 = vmul.f32 %v3231_v30, %v2161_v12  ;;  %v2229_v14 = vrot.slane %v2214_v1, %v2717_v42  ;;  %v2233_v37 = vrot.slane %v2218_v47, %v2717_v42  ;;  %v2124_v3 = vadd.f32 %v2118_v51, %v1964_v53 }
  0xe6   :  { %v2177_v49 = vrot.slane %v2166_v56, %v2717_v42  ;;  %v2181_v61 = vrot.slane %v2166_v56, %v2719_v43  ;;  %v2185_v15 = vrot.slane %v2167_v5, %v2717_v42  ;;  %v2189_v62 = vrot.slane %v2168_v36, %v2717_v42 }
  0xe7   :  { %v2193_v38 = vrot.slane %v2168_v36, %v2719_v43  ;;  %v2197_v50 = vrot.slane %v2169_v63, %v2717_v42  ;;  %v2237_v4 = vcombine.low %v2225_v34, %v2229_v14  ;;  %v2126_v18 = vadd.f32 %v2120_v27, %v1966_v26 }
  0xe8   :  { %v2239_v44 = vrot.slane %v2233_v37, 5  ;;  %v2241_v39 = vrot.slane %v2233_v37, 6  ;;  %v2198_v20 = vsel %vm209_vm0, %v2189_v62, %v2177_v49  ;;  %v2125_v60 = vadd.f32 %v2119_v11, %v3326_v58 }
  0xe9   :  { %v2199_v9 = vsel %vm209_vm0, %v2193_v38, %v2181_v61  ;;  %v2200_v7 = vsel %vm209_vm0, %v2197_v50, %v2185_v15  ;;  %v2238_v21 = vrot.slane %v2237_v4, 5  ;;  %v2204_v54 = vadd.f32 %v2198_v20, %v2044_v6 }
  0xea   :  { %v2205_v0 = vadd.f32 %v2199_v9, %v2045_v45  ;;  %v2206_v1 = vadd.f32 %v2200_v7, %v2046_v25  ;;  %v2240_v55 = vrot.slane %v2237_v4, 6  ;;  %v2247_v53 = vmul.f32 %v3214_v8, %v2239_v44  ;;  %v108_v9 = vld [vmem:[%s3411_s5] sm:$0x7]  ;;  %s2595_s5 = smov [#allocation11]  }
  0xeb   :  { %v2246_v16 = vmul.f32 %v3211_v46, %v2238_v21  ;;  %v2249_v26 = vmul.f32 %v3231_v30, %v2241_v39  ;;  %v2370_v10 = vmul.f32 -1.442695, %v2204_v54  ;;  %v832_v58 = vadd.f32 1.0, %v3001_v48  ;;  %s2347_s21 = sshll.u32 %s2595_s5, 4  ;;  %s2348_s21 = int_to_ptr.vmem [resolvable:$true] %s2347_s21 }
  0xec   :  { %v2248_v31 = vmul.f32 %v3228_v24, %v2240_v55  ;;  %v2371_v29 = vmul.f32 -1.442695, %v2205_v0  ;;  %v2372_v52 = vmul.f32 -1.442695, %v2206_v1  ;;  %v2265_v45 = vrot.slane %v2247_v53, %v2717_v42  ;;  %s2560_s22 = scalar_lea.vmem %s2348_s21, 32  ;;  %p2565_p12 = scmp.lt.s32.totalorder %s2348_s21, %s2348_s21 }
  0xed   :  { %v2257_v47 = vrot.slane %v2246_v16, %v2717_v42  ;;  %v2261_v6 = vrot.slane %v2246_v16, %v2719_v43  ;;  %v2277_v25 = vrot.slane %v2249_v26, %v2717_v42  ;;  %2414 = vpow2.f32 %v2370_v10  ;;  %p2561_p11 = scmp.ne.s32.totalorder %s2348_s21, %s2560_s22  ;;  %p2566_p13 = scmp.lt.s32.totalorder %s2560_s22, %s2560_s22 }
  0xee   :  { %v2269_v46 = vrot.slane %v2248_v31, %v2717_v42  ;;  %v2273_v8 = vrot.slane %v2248_v31, %v2719_v43  ;;  %v833_v24 = vadd.f32 1.0, %v3011_v23  ;;  %2416 = vpow2.f32 %v2371_v29 }
  0xef   :  { %v2280_v30 = vsel %vm209_vm0, %v2277_v25, %v2265_v45  ;;  %2418 = vpow2.f32 %v2372_v52  ;;  %v1563_v43 = vadd.f32 1.0, %v3217_v59  ;;  %v1561_v5 = vadd.f32 1.0, %v3234_v17  ;;  %p2567_p0 = por %p2566_p13, %p2565_p12 }
  0xf0   :  { %v2278_v27 = vsel %vm209_vm0, %v2269_v46, %v2257_v47  ;;  %v2279_v12 = vsel %vm209_vm0, %v2273_v8, %v2261_v6  ;;  %v2286_v51 = vadd.f32 %v2280_v30, %v2126_v18  ;;  %2420 = vrcp.f32 %v3220_v35 }
  0xf1   :  { %v2284_v11 = vadd.f32 %v2278_v27, %v2124_v3  ;;  %v2285_v48 = vadd.f32 %v2279_v12, %v2125_v60  ;;  %2422 = vrcp.f32 %v832_v58  ;;  %v1562_v36 = vadd.f32 1.0, %v3239_v28  ;;  %p2568_p1 = pnand %p2567_p0, %p2561_p11 }
  0xf2   :  { %v2375_v42 = vmul.f32 -1.442695, %v2286_v51  ;;  %2424 = vrcp.f32 %v833_v24  ;;  %v1581_v63 = vadd.f32 1.0, %v3267_v33  ;;  %v1579_v35 = vadd.f32 1.0, %v3282_v40 }
  0xf3   :  { %v2373_v56 = vmul.f32 -1.442695, %v2284_v11  ;;  %v2374_v23 = vmul.f32 -1.442695, %v2285_v48  ;;  %v1580_v34 = vadd.f32 1.0, %v3287_v41  ;;  %v855_v54 = vrot.slane %v108_v9, %v2702_v32 }
  0xf4   :  { %2426 = vpow2.f32 %v2375_v42  ;;  %v847_v55 = vrot.slane %v108_v9, %v2655_v2  ;;  %v851_v53 = vrot.slane %v108_v9, %v2684_v19 }
  0xf5   :  { %2428 = vpow2.f32 %v2373_v56 }
  0xf6   :  { %2430 = vpow2.f32 %v2374_v23 }
  0xf7   :  { %2432 = vrcp.f32 %v1563_v43 }
  0xf8   :  { %2434 = vrcp.f32 %v1561_v5 }
  0xf9   :  { %2436 = vrcp.f32 %v1562_v36 }
  0xfa   :  { %2438 = vrcp.f32 %v1581_v63  ;;  %v2415_v59 = vpop.eup %2414 }
  0xfb   :  { %2440 = vrcp.f32 %v1579_v35  ;;  %v2417_v14 = vpop.eup %2416  ;;  %v2296_v49 = vadd.f32 1.0, %v2415_v59 }
  0xfc   :  { %2442 = vrcp.f32 %v1580_v34  ;;  %v2419_v17 = vpop.eup %2418  ;;  %v2297_v37 = vadd.f32 1.0, %v2417_v14 }
  0xfd   :  { %v2421_v61 = vpop.eup %2420  ;;  %v2298_v28 = vadd.f32 1.0, %v2419_v17  ;;  %2444 = vrcp.f32 %v2296_v49 }
  0xfe   :  { %v2423_v15 = vpop.eup %2422  ;;  %v840_v1 = vmul.f32 %v2421_v61, %v3198_v22 }
  0xff   :  { %v2425_v33 = vpop.eup %2424  ;;  %2446 = vrcp.f32 %v2298_v28  ;;  %v841_v16 = vmul.f32 %v2423_v15, %v3204_v57 }
 0x100   :  { %2448 = vrcp.f32 %v2297_v37  ;;  %v842_v21 = vmul.f32 %v2425_v33, %v3192_v13  ;;  %v859_v47 = vadd.f32 %v847_v55, %v840_v1 }
 0x101   :  { %v2427_v62 = vpop.eup %2426  ;;  %v860_v45 = vadd.f32 %v851_v53, %v841_v16 }
 0x102   :  { %v2429_v38 = vpop.eup %2428  ;;  %v2316_v40 = vadd.f32 1.0, %v2427_v62  ;;  %v861_v10 = vadd.f32 %v855_v54, %v842_v21 }
 0x103   :  { %v2431_v50 = vpop.eup %2430  ;;  %v2314_v41 = vadd.f32 1.0, %v2429_v38 }
 0x104   :  { %v2433_v4 = vpop.eup %2432  ;;  %v2315_v3 = vadd.f32 1.0, %v2431_v50  ;;  %2450 = vrcp.f32 %v2316_v40 }
 0x105   :  { %v2435_v18 = vpop.eup %2434  ;;  %2452 = vrcp.f32 %v2314_v41 }
 0x106   :  { %v2437_v44 = vpop.eup %2436  ;;  %2454 = vrcp.f32 %v2315_v3 }
 0x107   :  { %v2439_v39 = vpop.eup %2438 }
 0x108   :  { %v2441_v20 = vpop.eup %2440  ;;  %v1590_v0 = vmul.f32 %v2439_v39, %v2433_v4 }
 0x109   :  { %v2443_v7 = vpop.eup %2442  ;;  %v1588_v60 = vmul.f32 %v2441_v20, %v2435_v18 }
 0x10a   :  { %v1589_v26 = vmul.f32 %v2443_v7, %v2437_v44  ;;  %v2445_v31 = vpop.eup %2444  ;;  %v1593_v29 = vadd.f32 %v1590_v0, %v855_v54 }
 0x10b   :  { %v1591_v6 = vadd.f32 %v1588_v60, %v847_v55 }
 0x10c   :  { %v2447_v52 = vpop.eup %2446  ;;  %v1592_v32 = vadd.f32 %v1589_v26, %v851_v53  ;;  %v1596_v22 = vmax.f32 %v861_v10, %v1593_v29 }
 0x10d   :  { %v2449_v13 = vpop.eup %2448  ;;  %v1594_v8 = vmax.f32 %v859_v47, %v1591_v6 }
 0x10e   :  { %v1595_v57 = vmax.f32 %v860_v45, %v1592_v32 }
 0x111   :  { %v2451_v25 = vpop.eup %2450 }
 0x112   :  { %v2453_v58 = vpop.eup %2452  ;;  %v2325_v46 = vmul.f32 %v2451_v25, %v2447_v52 }
 0x113   :  { %v2455_v2 = vpop.eup %2454  ;;  %v2323_v24 = vmul.f32 %v2453_v58, %v2445_v31 }
 0x114   :  { %v2324_v30 = vmul.f32 %v2455_v2, %v2449_v13  ;;  %v2328_v19 = vadd.f32 %v2325_v46, %v855_v54 }
 0x115   :  { %v2326_v27 = vadd.f32 %v2323_v24, %v847_v55 }
 0x116   :  { %v2327_v12 = vadd.f32 %v2324_v30, %v851_v53  ;;  %v2331_v51 = vmax.f32 %v1596_v22, %v2328_v19 }
 0x117   :  { %v2329_v11 = vmax.f32 %v1594_v8, %v2326_v27 }
 0x118   :  { %v2330_v48 = vmax.f32 %v1595_v57, %v2327_v12  ;;  %v2335_v56 = vsel %vm2332_vm1, %v2331_v51, -inf }
 0x119   :  { %v2333_v42 = vsel %vm2332_vm1, %v2329_v11, -inf }
 0x11a   :  { %v2334_v43 = vsel %vm2332_vm1, %v2330_v48, -inf }
 0x11b   :  { %v2336_v23 = vmax.f32 %v2333_v42, %v2334_v43 }
 0x11d   :  { %v2337_v5 = vmax.f32 %v2336_v23, %v2335_v56 }
 0x11f   :  { %2338 = vmax.xlane.f32.xlu0 %v2337_v5 }
 0x1a8   :  { %v2339_v36 = vpop.xlane.xlu0 %2338 }
 0x1a9   :  { %2340 = vst [vmem:[#allocation11] sm:$0x3] %v2339_v36 }
 0x1aa   :  { %2571 = shalt.err (!%p2568_p1)
}
 0x1ab   :  { %2350 = dma.vmem_to_hbm [thread:$0]  %s2348_s21, 32, %s3412_s6, [#allocation4]  }
 0x1ac   :  { %2586 = dma.done.wait [#allocation4], 32  }
 0x1ad   :  { %2587 = vsyncadd [#allocation4], 4294967264 }
 0x1ae   :  { %2354 = vsyncpa [#allocation3], 1 }
 0x1af   :  { %2355 = vsyncpa [#allocation6], 1 }
 0x1b0   :  { %2356 = vsyncpa [#allocation9], 1 }
 0x1b1   :  { %2357 = vsyncpa [#allocation4], 1 }

</bundles_post_ra>
